<compile_context>
chip_gen: v5e
topology: v5e:2x2
jax: 0.10.0
libtpu: 0.0.40
codegen_flags: <defaults>
</compile_context>

<pallas_src>
import functools

import jax
import jax.numpy as jnp
from jax import lax
from jax.experimental import pallas as pl
from jax.experimental.pallas import tpu as pltpu

EPS = 1e-5
LANE = 128

# Raise the scoped-VMEM budget (v5e default is 16 MiB) and let the 1-D grid be
# split across TensorCores (v7x megacore).
_PARAMS = pltpu.CompilerParams(
    dimension_semantics=("parallel",),
    vmem_limit_bytes=32 * 1024 * 1024,
)


def _rup(x, m):
    return (x + m - 1) // m * m


# ------------------------------ kernels -------------------------------------
# All kernels run on the same 1-D grid: tile i = BN whole images = TM rows of
# the channels-last (Mp, C) slabs.

def _k_conv1_stats(x_ref, w_ref, h_ref, st_ref):
    """h1 = x @ w1 (bf16 MXU inputs, f32 accumulation) + BN1 partial moments.

    x is read as f32 (it is also the stage-3 residual) and cast in-kernel, so
    no separate bf16 copy of the input ever hits HBM."""
    xb = x_ref[...].astype(jnp.bfloat16)
    h = jnp.dot(xb, w_ref[...], preferred_element_type=jnp.float32)
    h_ref[...] = h.astype(h_ref.dtype)
    # rows 2..7 of the stats block are never read -> write only rows 0/1
    st_ref[0:1, :] = jnp.sum(h, axis=0, keepdims=True)
    st_ref[1:2, :] = jnp.sum(h * h, axis=0, keepdims=True)


def _k_conv2_stats(h1_ref, s1_ref, b1_ref, w2_ref, h2_ref, st_ref, ypad_ref,
                   *, bn_img, hh, ww, pp, tm, m_real):
    """Fused bn1+relu -> 3x3 conv (9 shifted MXU matmuls) -> BN2 partial moments.

    The +-1 spatial halo lives entirely in a zero-padded VMEM scratch; no
    (M, 9*Pp) im2col slab is materialized in HBM."""
    y1 = jnp.maximum(
        h1_ref[...].astype(jnp.float32) * s1_ref[...] + b1_ref[...], 0.0)
    # zero rows belonging to batch-padding images so they cannot pollute the
    # conv output / BN2 statistics (bn1 bias makes them nonzero otherwise)
    rows = pl.program_id(0) * tm + lax.broadcasted_iota(jnp.int32, (tm, pp), 0)
    y1 = jnp.where(rows < m_real, y1, 0.0)

    ypad_ref[...] = jnp.zeros_like(ypad_ref)              # conv zero padding
    ypad_ref[:, 1:hh + 1, 1:ww + 1, :] = y1.reshape(bn_img, hh, ww, pp)

    acc = jnp.zeros((tm, pp), jnp.float32)
    for k in range(9):                                     # unrolled: 9 taps
        dy, dx = k // 3, k % 3
        tap = ypad_ref[:, dy:dy + hh, dx:dx + ww, :].reshape(tm, pp)
        acc += jnp.dot(tap.astype(jnp.bfloat16), w2_ref[k],
                       preferred_element_type=jnp.float32)

    h2_ref[...] = acc.astype(h2_ref.dtype)
    st_ref[0:1, :] = jnp.sum(acc, axis=0, keepdims=True)
    st_ref[1:2, :] = jnp.sum(acc * acc, axis=0, keepdims=True)


def _k_gram_stats(h2_ref, s2_ref, b2_ref, g_ref, s_ref, *, tm, m_real):
    """Per-tile Gram G = y2^T y2 and column sums of y2 = relu(bn2(h2)).

    BN3 moments are recovered from (sum G, sum y2, w3) in tiny JAX glue:
    sum(h3) = (sum y2) @ w3 and sum(h3^2) = diag(w3^T G w3).  This costs
    TM*Pp^2 MXU flops per tile instead of TM*Pp*Cp (4x less when Cp = 4*Pp)
    and the conv3 pre-activation never touches HBM."""
    y2 = jnp.maximum(
        h2_ref[...].astype(jnp.float32) * s2_ref[...] + b2_ref[...], 0.0)
    rows = pl.program_id(0) * tm + lax.broadcasted_iota(jnp.int32, y2.shape, 0)
    y2 = jnp.where(rows < m_real, y2, 0.0)
    s_ref[0:1, :] = jnp.sum(y2, axis=0, keepdims=True)
    y2b = y2.astype(jnp.bfloat16)
    g_ref[...] = lax.dot_general(y2b, y2b, (((0,), (0,)), ((), ())),
                                 preferred_element_type=jnp.float32)


def _k_conv3_out(h2_ref, s2_ref, b2_ref, w3_ref, s3_ref, b3_ref, xr_ref, o_ref):
    """out = relu(bn3(relu(bn2(h2)) @ w3) + residual), fully fused per tile."""
    y2 = jnp.maximum(
        h2_ref[...].astype(jnp.float32) * s2_ref[...] + b2_ref[...], 0.0)
    h3 = jnp.dot(y2.astype(jnp.bfloat16), w3_ref[...],
                 preferred_element_type=jnp.float32)
    o_ref[...] = jnp.maximum(h3 * s3_ref[...] + b3_ref[...] + xr_ref[...], 0.0)


# ------------------------------ BN glue (tiny, plain JAX) --------------------

def _bn_fold(mean, var, gamma, beta, c_pad):
    g = jnp.pad(gamma, (0, c_pad - gamma.shape[0]))
    b = jnp.pad(beta, (0, c_pad - beta.shape[0]))
    scale = g * lax.rsqrt(var + EPS)
    bias = b - mean * scale
    return scale.reshape(1, c_pad), bias.reshape(1, c_pad)


def _bn_from_partials(st, count, gamma, beta, c_pad):
    # NOTE: E[x^2]-E[x]^2 in f32 matches the reference formula; a shifted
    # two-pass accumulation would be safer for |mean| >> std channels.
    st = st.reshape(-1, 8, st.shape[-1])
    s = jnp.sum(st[:, 0, :], axis=0)
    sq = jnp.sum(st[:, 1, :], axis=0)
    mean = s / count
    var = jnp.maximum(sq / count - mean * mean, 0.0)
    return _bn_fold(mean, var, gamma, beta, c_pad)


def _bn3_from_gram(g_parts, s_parts, w3f, count, gamma, beta, c_pad):
    pp = w3f.shape[0]
    gram = jnp.sum(g_parts.reshape(-1, pp, pp), axis=0)
    s = jnp.sum(s_parts.reshape(-1, 8, pp)[:, 0, :], axis=0)
    sum1 = s @ w3f                                    # sum_m h3[m, :]
    sum2 = jnp.sum(w3f * (gram @ w3f), axis=0)        # sum_m h3[m, :]**2
    mean = sum1 / count
    var = jnp.maximum(sum2 / count - mean * mean, 0.0)
    return _bn_fold(mean, var, gamma, beta, c_pad)


# ------------------------------ Bottleneck forward ---------------------------

def init_params(key, inplanes, planes):
    """Deterministic synthetic parameters, PyTorch-convention shapes (OIHW)."""
    ks = jax.random.split(key, 9)
    P, C4 = planes, planes * 4
    return {
        "w1": 0.1 * jax.random.normal(ks[0], (P, inplanes, 1, 1), jnp.float32),
        "g1": 1.0 + 0.1 * jax.random.normal(ks[1], (P,), jnp.float32),
        "b1": 0.1 * jax.random.normal(ks[2], (P,), jnp.float32),
        "w2": 0.1 * jax.random.normal(ks[3], (P, P, 3, 3), jnp.float32),
        "g2": 1.0 + 0.1 * jax.random.normal(ks[4], (P,), jnp.float32),
        "b2": 0.1 * jax.random.normal(ks[5], (P,), jnp.float32),
        "w3": 0.1 * jax.random.normal(ks[6], (C4, P, 1, 1), jnp.float32),
        "g3": 1.0 + 0.1 * jax.random.normal(ks[7], (C4,), jnp.float32),
        "b3": 0.1 * jax.random.normal(ks[8], (C4,), jnp.float32),
    }


def bottleneck_forward(x_nchw, p, stride=1, tm_target=512):
    assert stride == 1, "downsample=None requires stride=1 for the residual add"
    N, Cin, H, W = x_nchw.shape
    P = p["w1"].shape[0]
    C4 = p["w3"].shape[0]
    assert Cin == C4, "downsample=None requires inplanes == planes*4"

    rows_img = H * W
    M = N * rows_img
    Cp = _rup(max(Cin, LANE), LANE)          # padded in/out channels (lane-dense)
    Pp = _rup(max(P, LANE), LANE)            # padded mid channels

    # Whole-image tiles: BN images per grid step, TM = BN*H*W rows.
    bn_img = max(1, min(tm_target // rows_img, N))
    if N >= 2:
        bn_img = min(bn_img, (N + 1) // 2)   # >= 2 grid tiles for v7x megacore
    while (bn_img * rows_img) % 8:
        bn_img += 1                          # sublane-align the row tile
    TM = bn_img * rows_img
    Np = _rup(N, bn_img)
    nt = Np // bn_img
    Mp = Np * rows_img

    # Channels-last, spatially flattened, zero-padded f32 slab.  It feeds
    # stage 1 (cast in-kernel) AND is the stage-3 residual -> single HBM copy.
    x2d = jnp.transpose(x_nchw, (0, 2, 3, 1)).reshape(M, Cin)
    x2d = jnp.pad(x2d, ((0, Mp - M), (0, Cp - Cin)))

    # Weights: (in, out) layout, channel-padded, bf16 (native MXU).
    w1 = jnp.pad(p["w1"].reshape(P, Cin).T,
                 ((0, Cp - Cin), (0, Pp - P))).astype(jnp.bfloat16)
    w2 = jnp.transpose(p["w2"], (2, 3, 1, 0)).reshape(9, P, P)   # (tap, in, out)
    w2 = jnp.pad(w2, ((0, 0), (0, Pp - P), (0, Pp - P))).astype(jnp.bfloat16)
    w3 = jnp.pad(p["w3"].reshape(C4, P).T,
                 ((0, Pp - P), (0, Cp - C4))).astype(jnp.bfloat16)

    # ---- stage 1: conv1 (1x1) + BN1 partial moments -------------------------
    h1, st1 = pl.pallas_call(
        _k_conv1_stats,
        grid=(nt,),
        in_specs=[pl.BlockSpec((TM, Cp), lambda i: (i, 0)),
                  pl.BlockSpec((Cp, Pp), lambda i: (0, 0))],       # resident
        out_specs=[pl.BlockSpec((TM, Pp), lambda i: (i, 0)),
                   pl.BlockSpec((8, Pp), lambda i: (i, 0))],
        out_shape=[jax.ShapeDtypeStruct((Mp, Pp), jnp.bfloat16),
                   jax.ShapeDtypeStruct((nt * 8, Pp), jnp.float32)],
        compiler_params=_PARAMS,
    )(x2d, w1)
    s1, b1 = _bn_from_partials(st1, M, p["g1"], p["b1"], Pp)

    # ---- stage 2: fused bn1+relu -> 3x3 conv (in-kernel halo) -> BN2 moments -
    h2, st2 = pl.pallas_call(
        functools.partial(_k_conv2_stats, bn_img=bn_img, hh=H, ww=W, pp=Pp,
                          tm=TM, m_real=M),
        grid=(nt,),
        in_specs=[pl.BlockSpec((TM, Pp), lambda i: (i, 0)),
                  pl.BlockSpec((1, Pp), lambda i: (0, 0)),
                  pl.BlockSpec((1, Pp), lambda i: (0, 0)),
                  pl.BlockSpec((9, Pp, Pp), lambda i: (0, 0, 0))],  # resident
        out_specs=[pl.BlockSpec((TM, Pp), lambda i: (i, 0)),
                   pl.BlockSpec((8, Pp), lambda i: (i, 0))],
        out_shape=[jax.ShapeDtypeStruct((Mp, Pp), jnp.bfloat16),
                   jax.ShapeDtypeStruct((nt * 8, Pp), jnp.float32)],
        scratch_shapes=[pltpu.VMEM((bn_img, H + 2, W + 2, Pp), jnp.float32)],
        compiler_params=_PARAMS,
    )(h1, s1, b1, w2)
    s2, b2 = _bn_from_partials(st2, M, p["g2"], p["b2"], Pp)

    # ---- stage 3a: BN3 moments via per-tile Gram of y2 = relu(bn2(h2)) ------
    g_parts, s_parts = pl.pallas_call(
        functools.partial(_k_gram_stats, tm=TM, m_real=M),
        grid=(nt,),
        in_specs=[pl.BlockSpec((TM, Pp), lambda i: (i, 0)),
                  pl.BlockSpec((1, Pp), lambda i: (0, 0)),
                  pl.BlockSpec((1, Pp), lambda i: (0, 0))],
        out_specs=[pl.BlockSpec((Pp, Pp), lambda i: (i, 0)),
                   pl.BlockSpec((8, Pp), lambda i: (i, 0))],
        out_shape=[jax.ShapeDtypeStruct((nt * Pp, Pp), jnp.float32),
                   jax.ShapeDtypeStruct((nt * 8, Pp), jnp.float32)],
        compiler_params=_PARAMS,
    )(h2, s2, b2)
    s3, b3 = _bn3_from_gram(g_parts, s_parts, w3.astype(jnp.float32), M,
                            p["g3"], p["b3"], Cp)

    # ---- stage 3b: fused bn2+relu -> conv3 -> bn3 -> +residual -> relu ------
    out2d = pl.pallas_call(
        _k_conv3_out,
        grid=(nt,),
        in_specs=[pl.BlockSpec((TM, Pp), lambda i: (i, 0)),
                  pl.BlockSpec((1, Pp), lambda i: (0, 0)),
                  pl.BlockSpec((1, Pp), lambda i: (0, 0)),
                  pl.BlockSpec((Pp, Cp), lambda i: (0, 0)),        # resident
                  pl.BlockSpec((1, Cp), lambda i: (0, 0)),
                  pl.BlockSpec((1, Cp), lambda i: (0, 0)),
                  pl.BlockSpec((TM, Cp), lambda i: (i, 0))],       # f32 residual
        out_specs=pl.BlockSpec((TM, Cp), lambda i: (i, 0)),
        out_shape=jax.ShapeDtypeStruct((Mp, Cp), jnp.float32),
        compiler_params=_PARAMS,
    )(h2, s2, b2, w3, s3, b3, x2d)

    out = out2d[:M, :C4].reshape(N, H, W, C4)
    return jnp.transpose(out, (0, 3, 1, 2))


# ------------------------------ pure-JAX reference ---------------------------

def bottleneck_reference(x, p):
    def bn(h, g, b):
        mu = jnp.mean(h, axis=(0, 2, 3), keepdims=True)
        var = jnp.mean(h * h, axis=(0, 2, 3), keepdims=True) - mu * mu
        return ((h - mu) * lax.rsqrt(var + EPS) * g.reshape(1, -1, 1, 1)
                + b.reshape(1, -1, 1, 1))

    dn = ("NCHW", "OIHW", "NCHW")
    prec = lax.Precision.HIGHEST
    h = lax.conv_general_dilated(x, p["w1"], (1, 1), "VALID",
                                 dimension_numbers=dn, precision=prec)
    h = jax.nn.relu(bn(h, p["g1"], p["b1"]))
    h = lax.conv_general_dilated(h, p["w2"], (1, 1), ((1, 1), (1, 1)),
                                 dimension_numbers=dn, precision=prec)
    h = jax.nn.relu(bn(h, p["g2"], p["b2"]))
    h = lax.conv_general_dilated(h, p["w3"], (1, 1), "VALID",
                                 dimension_numbers=dn, precision=prec)
    return jax.nn.relu(bn(h, p["g3"], p["b3"]) + x)


# ------------------------------ main -----------------------------------------

if __name__ == "__main__":
    key = jax.random.PRNGKey(0)
    kx, kp = jax.random.split(key)

    # inplanes must equal planes * expansion (=4) since downsample is None.
    N, inplanes, planes, H, W = 2, 32, 8, 8, 8
    x = jax.random.normal(kx, (N, inplanes, H, W), jnp.float32)
    params = init_params(kp, inplanes, planes)

    fwd = jax.jit(bottleneck_forward)
    out = jax.block_until_ready(fwd(x, params))

    ref = bottleneck_reference(x, params)
    assert out.shape == ref.shape == (N, inplanes, H, W)
    # bf16 MXU inputs / bf16-stored intermediates vs an f32 HIGHEST reference.
    max_err = float(jnp.max(jnp.abs(out - ref)))
    assert max_err < 1e-1, f"max abs err too large: {max_err}"

    print("KERNEL_OK")
</pallas_src>

<mosaic_0001>
module attributes {stable_mosaic.version = 11 : i64} {
  func.func @_k_conv1_stats(%arg0: i32, %arg1: memref<64x128xf32, #tpu.memory_space<vmem>>, %arg2: memref<128x128xbf16, #tpu.memory_space<vmem>>, %arg3: memref<64x128xbf16, #tpu.memory_space<vmem>>, %arg4: memref<8x128xf32, #tpu.memory_space<vmem>>) attributes {dimension_semantics = [#tpu.dimension_semantics<parallel>], iteration_bounds = array<i64: 2>, scalar_prefetch = 0 : i64, scratch_operands = 0 : i64, tpu.core_type = #tpu.core_type<tc>, window_params = [{transform_indices = @transform_0, window_bounds = array<i64: 64, 128>}, {pipeline_mode = #tpu.pipeline_mode<synchronous>, transform_indices = @transform_1, window_bounds = array<i64: 128, 128>}, {transform_indices = @transform_2, window_bounds = array<i64: 64, 128>}, {transform_indices = @transform_3, window_bounds = array<i64: 8, 128>}]} {
    %c0 = arith.constant 0 : index
    %c0_0 = arith.constant 0 : index
    %0 = vector.load %arg1[%c0, %c0_0] : memref<64x128xf32, #tpu.memory_space<vmem>>, vector<64x128xf32>
    %1 = arith.truncf %0 : vector<64x128xf32> to vector<64x128xbf16>
    %c0_1 = arith.constant 0 : index
    %c0_2 = arith.constant 0 : index
    %2 = vector.load %arg2[%c0_1, %c0_2] : memref<128x128xbf16, #tpu.memory_space<vmem>>, vector<128x128xbf16>
    %cst = arith.constant dense<0.000000e+00> : vector<64x128xf32>
    %3 = tpu.matmul %1, %2, %cst {dimension_numbers = #tpu.dot_dimension_numbers<[1], [0], [0], [1], [0, 0, 1, 1], [], []>} : vector<64x128xbf16>, vector<128x128xbf16>, vector<64x128xf32> -> vector<64x128xf32>
    %4 = arith.truncf %3 : vector<64x128xf32> to vector<64x128xbf16>
    %c0_3 = arith.constant 0 : index
    %c0_4 = arith.constant 0 : index
    %5 = vector.load %arg3[%c0_3, %c0_4] : memref<64x128xbf16, #tpu.memory_space<vmem>>, vector<64x128xbf16>
    tpu.vector_store %arg3[%c0_3, %c0_4], %4 {strides = array<i32>} : memref<64x128xbf16, #tpu.memory_space<vmem>>, vector<64x128xbf16>,
    %cst_5 = arith.constant dense<0.000000e+00> : vector<128xf32>
    %6 = vector.multi_reduction <add>, %3, %cst_5 [0] : vector<64x128xf32> to vector<128xf32>
    %7 = vector.shape_cast %6 : vector<128xf32> to vector<1x128xf32>
    %c0_6 = arith.constant 0 : index
    %c0_7 = arith.constant 0 : index
    %8 = vector.load %arg4[%c0_6, %c0_7] : memref<8x128xf32, #tpu.memory_space<vmem>>, vector<1x128xf32>
    tpu.vector_store %arg4[%c0_6, %c0_7], %7 {strides = array<i32>} : memref<8x128xf32, #tpu.memory_space<vmem>>, vector<1x128xf32>,
    %9 = arith.mulf %3, %3 : vector<64x128xf32>
    %cst_8 = arith.constant dense<0.000000e+00> : vector<128xf32>
    %10 = vector.multi_reduction <add>, %9, %cst_8 [0] : vector<64x128xf32> to vector<128xf32>
    %11 = vector.shape_cast %10 : vector<128xf32> to vector<1x128xf32>
    %c1 = arith.constant 1 : index
    %c0_9 = arith.constant 0 : index
    %12 = vector.load %arg4[%c1, %c0_9] : memref<8x128xf32, #tpu.memory_space<vmem>>, vector<1x128xf32>
    tpu.vector_store %arg4[%c1, %c0_9], %11 {strides = array<i32>} : memref<8x128xf32, #tpu.memory_space<vmem>>, vector<1x128xf32>,
    return
  }
  func.func @transform_0(%arg0: i32) -> (i32, i32) {
    %c0_i32 = arith.constant 0 : i32
    %c0_i32_0 = arith.constant 0 : i32
    return %arg0, %c0_i32 : i32, i32
  }
  func.func @transform_1(%arg0: i32) -> (i32, i32) {
    %c0_i32 = arith.constant 0 : i32
    %c0_i32_0 = arith.constant 0 : i32
    %c0_i32_1 = arith.constant 0 : i32
    return %c0_i32, %c0_i32_0 : i32, i32
  }
  func.func @transform_2(%arg0: i32) -> (i32, i32) {
    %c0_i32 = arith.constant 0 : i32
    %c0_i32_0 = arith.constant 0 : i32
    return %arg0, %c0_i32 : i32, i32
  }
  func.func @transform_3(%arg0: i32) -> (i32, i32) {
    %c0_i32 = arith.constant 0 : i32
    %c0_i32_0 = arith.constant 0 : i32
    return %arg0, %c0_i32 : i32, i32
  }
}

module attributes {stable_mosaic.version = 11 : i64} {
  func.func @_k_conv2_stats(%arg0: i32, %arg1: memref<64x128xbf16, #tpu.memory_space<vmem>>, %arg2: memref<1x128xf32, #tpu.memory_space<vmem>>, %arg3: memref<1x128xf32, #tpu.memory_space<vmem>>, %arg4: memref<9x128x128xbf16, #tpu.memory_space<vmem>>, %arg5: memref<64x128xbf16, #tpu.memory_space<vmem>>, %arg6: memref<8x128xf32, #tpu.memory_space<vmem>>, %arg7: memref<1x10x10x128xf32, #tpu.memory_space<vmem>>) attributes {dimension_semantics = [#tpu.dimension_semantics<parallel>], iteration_bounds = array<i64: 2>, scalar_prefetch = 0 : i64, scratch_operands = 1 : i64, tpu.core_type = #tpu.core_type<tc>, window_params = [{transform_indices = @transform_0, window_bounds = array<i64: 64, 128>}, {pipeline_mode = #tpu.pipeline_mode<synchronous>, transform_indices = @transform_1, window_bounds = array<i64: 1, 128>}, {pipeline_mode = #tpu.pipeline_mode<synchronous>, transform_indices = @transform_2, window_bounds = array<i64: 1, 128>}, {pipeline_mode = #tpu.pipeline_mode<synchronous>, transform_indices = @transform_3, window_bounds = array<i64: 9, 128, 128>}, {transform_indices = @transform_4, window_bounds = array<i64: 64, 128>}, {transform_indices = @transform_5, window_bounds = array<i64: 8, 128>}]} {
    %c0 = arith.constant 0 : index
    %c0_0 = arith.constant 0 : index
    %0 = vector.load %arg1[%c0, %c0_0] : memref<64x128xbf16, #tpu.memory_space<vmem>>, vector<64x128xbf16>
    %1 = arith.extf %0 : vector<64x128xbf16> to vector<64x128xf32>
    %c0_1 = arith.constant 0 : index
    %c0_2 = arith.constant 0 : index
    %2 = vector.load %arg2[%c0_1, %c0_2] : memref<1x128xf32, #tpu.memory_space<vmem>>, vector<1x128xf32>
    %3 = vector.broadcast %2 : vector<1x128xf32> to vector<64x128xf32>
    %4 = arith.mulf %1, %3 : vector<64x128xf32>
    %c0_3 = arith.constant 0 : index
    %c0_4 = arith.constant 0 : index
    %5 = vector.load %arg3[%c0_3, %c0_4] : memref<1x128xf32, #tpu.memory_space<vmem>>, vector<1x128xf32>
    %6 = vector.broadcast %5 : vector<1x128xf32> to vector<64x128xf32>
    %7 = arith.addf %4, %6 : vector<64x128xf32>
    %cst = arith.constant 0.000000e+00 : f32
    %8 = vector.broadcast %cst : f32 to vector<64x128xf32>
    %9 = arith.maximumf %7, %8 : vector<64x128xf32>
    %c64_i32 = arith.constant 64 : i32
    %10 = arith.muli %arg0, %c64_i32 : i32
    %11 = tpu.iota {dimensions = array<i32: 0>} : vector<64x128xi32>
    %12 = vector.broadcast %10 : i32 to vector<64x128xi32>
    %13 = arith.addi %12, %11 : vector<64x128xi32>
    %c128_i32 = arith.constant 128 : i32
    %14 = vector.broadcast %c128_i32 : i32 to vector<64x128xi32>
    %15 = arith.cmpi slt, %13, %14 : vector<64x128xi32>
    %cst_5 = arith.constant 0.000000e+00 : f32
    %16 = vector.broadcast %cst_5 : f32 to vector<64x128xf32>
    %17 = arith.select %15, %9, %16 : vector<64x128xi1>, vector<64x128xf32>
    %cst_6 = arith.constant 0.000000e+00 : f32
    %18 = vector.broadcast %cst_6 : f32 to vector<1x10x10x128xf32>
    %c0_7 = arith.constant 0 : index
    %c0_8 = arith.constant 0 : index
    %c0_9 = arith.constant 0 : index
    %c0_10 = arith.constant 0 : index
    %19 = vector.load %arg7[%c0_7, %c0_8, %c0_9, %c0_10] : memref<1x10x10x128xf32, #tpu.memory_space<vmem>>, vector<1x10x10x128xf32>
    tpu.vector_store %arg7[%c0_7, %c0_8, %c0_9, %c0_10], %18 {strides = array<i32>} : memref<1x10x10x128xf32, #tpu.memory_space<vmem>>, vector<1x10x10x128xf32>,
    %20 = vector.shape_cast %17 : vector<64x128xf32> to vector<1x8x8x128xf32>
    %c0_11 = arith.constant 0 : index
    %c1 = arith.constant 1 : index
    %c1_12 = arith.constant 1 : index
    %c0_13 = arith.constant 0 : index
    %21 = vector.load %arg7[%c0_11, %c1, %c1_12, %c0_13] : memref<1x10x10x128xf32, #tpu.memory_space<vmem>>, vector<1x8x8x128xf32>
    tpu.vector_store %arg7[%c0_11, %c1, %c1_12, %c0_13], %20 {strides = array<i32>} : memref<1x10x10x128xf32, #tpu.memory_space<vmem>>, vector<1x8x8x128xf32>,
    %cst_14 = arith.constant 0.000000e+00 : f32
    %22 = vector.broadcast %cst_14 : f32 to vector<64x128xf32>
    %c0_15 = arith.constant 0 : index
    %c0_16 = arith.constant 0 : index
    %c0_17 = arith.constant 0 : index
    %c0_18 = arith.constant 0 : index
    %23 = vector.load %arg7[%c0_15, %c0_16, %c0_17, %c0_18] : memref<1x10x10x128xf32, #tpu.memory_space<vmem>>, vector<1x8x8x128xf32>
    %24 = vector.shape_cast %23 : vector<1x8x8x128xf32> to vector<64x128xf32>
    %25 = arith.truncf %24 : vector<64x128xf32> to vector<64x128xbf16>
    %c0_19 = arith.constant 0 : index
    %c0_20 = arith.constant 0 : index
    %c0_21 = arith.constant 0 : index
    %26 = vector.load %arg4[%c0_19, %c0_20, %c0_21] : memref<9x128x128xbf16, #tpu.memory_space<vmem>>, vector<1x128x128xbf16>
    %27 = vector.shape_cast %26 : vector<1x128x128xbf16> to vector<128x128xbf16>
    %cst_22 = arith.constant dense<0.000000e+00> : vector<64x128xf32>
    %28 = tpu.matmul %25, %27, %cst_22 {dimension_numbers = #tpu.dot_dimension_numbers<[1], [0], [0], [1], [0, 0, 1, 1], [], []>} : vector<64x128xbf16>, vector<128x128xbf16>, vector<64x128xf32> -> vector<64x128xf32>
    %29 = arith.addf %22, %28 : vector<64x128xf32>
    %c0_23 = arith.constant 0 : index
    %c0_24 = arith.constant 0 : index
    %c1_25 = arith.constant 1 : index
    %c0_26 = arith.constant 0 : index
    %30 = vector.load %arg7[%c0_23, %c0_24, %c1_25, %c0_26] : memref<1x10x10x128xf32, #tpu.memory_space<vmem>>, vector<1x8x8x128xf32>
    %31 = vector.shape_cast %30 : vector<1x8x8x128xf32> to vector<64x128xf32>
    %32 = arith.truncf %31 : vector<64x128xf32> to vector<64x128xbf16>
    %c1_27 = arith.constant 1 : index
    %c0_28 = arith.constant 0 : index
    %c0_29 = arith.constant 0 : index
    %33 = vector.load %arg4[%c1_27, %c0_28, %c0_29] : memref<9x128x128xbf16, #tpu.memory_space<vmem>>, vector<1x128x128xbf16>
    %34 = vector.shape_cast %33 : vector<1x128x128xbf16> to vector<128x128xbf16>
    %cst_30 = arith.constant dense<0.000000e+00> : vector<64x128xf32>
    %35 = tpu.matmul %32, %34, %cst_30 {dimension_numbers = #tpu.dot_dimension_numbers<[1], [0], [0], [1], [0, 0, 1, 1], [], []>} : vector<64x128xbf16>, vector<128x128xbf16>, vector<64x128xf32> -> vector<64x128xf32>
    %36 = arith.addf %29, %35 : vector<64x128xf32>
    %c0_31 = arith.constant 0 : index
    %c0_32 = arith.constant 0 : index
    %c2 = arith.constant 2 : index
    %c0_33 = arith.constant 0 : index
    %37 = vector.load %arg7[%c0_31, %c0_32, %c2, %c0_33] : memref<1x10x10x128xf32, #tpu.memory_space<vmem>>, vector<1x8x8x128xf32>
    %38 = vector.shape_cast %37 : vector<1x8x8x128xf32> to vector<64x128xf32>
    %39 = arith.truncf %38 : vector<64x128xf32> to vector<64x128xbf16>
    %c2_34 = arith.constant 2 : index
    %c0_35 = arith.constant 0 : index
    %c0_36 = arith.constant 0 : index
    %40 = vector.load %arg4[%c2_34, %c0_35, %c0_36] : memref<9x128x128xbf16, #tpu.memory_space<vmem>>, vector<1x128x128xbf16>
    %41 = vector.shape_cast %40 : vector<1x128x128xbf16> to vector<128x128xbf16>
    %cst_37 = arith.constant dense<0.000000e+00> : vector<64x128xf32>
    %42 = tpu.matmul %39, %41, %cst_37 {dimension_numbers = #tpu.dot_dimension_numbers<[1], [0], [0], [1], [0, 0, 1, 1], [], []>} : vector<64x128xbf16>, vector<128x128xbf16>, vector<64x128xf32> -> vector<64x128xf32>
    %43 = arith.addf %36, %42 : vector<64x128xf32>
    %c0_38 = arith.constant 0 : index
    %c1_39 = arith.constant 1 : index
    %c0_40 = arith.constant 0 : index
    %c0_41 = arith.constant 0 : index
    %44 = vector.load %arg7[%c0_38, %c1_39, %c0_40, %c0_41] : memref<1x10x10x128xf32, #tpu.memory_space<vmem>>, vector<1x8x8x128xf32>
    %45 = vector.shape_cast %44 : vector<1x8x8x128xf32> to vector<64x128xf32>
    %46 = arith.truncf %45 : vector<64x128xf32> to vector<64x128xbf16>
    %c3 = arith.constant 3 : index
    %c0_42 = arith.constant 0 : index
    %c0_43 = arith.constant 0 : index
    %47 = vector.load %arg4[%c3, %c0_42, %c0_43] : memref<9x128x128xbf16, #tpu.memory_space<vmem>>, vector<1x128x128xbf16>
    %48 = vector.shape_cast %47 : vector<1x128x128xbf16> to vector<128x128xbf16>
    %cst_44 = arith.constant dense<0.000000e+00> : vector<64x128xf32>
    %49 = tpu.matmul %46, %48, %cst_44 {dimension_numbers = #tpu.dot_dimension_numbers<[1], [0], [0], [1], [0, 0, 1, 1], [], []>} : vector<64x128xbf16>, vector<128x128xbf16>, vector<64x128xf32> -> vector<64x128xf32>
    %50 = arith.addf %43, %49 : vector<64x128xf32>
    %c0_45 = arith.constant 0 : index
    %c1_46 = arith.constant 1 : index
    %c1_47 = arith.constant 1 : index
    %c0_48 = arith.constant 0 : index
    %51 = vector.load %arg7[%c0_45, %c1_46, %c1_47, %c0_48] : memref<1x10x10x128xf32, #tpu.memory_space<vmem>>, vector<1x8x8x128xf32>
    %52 = vector.shape_cast %51 : vector<1x8x8x128xf32> to vector<64x128xf32>
    %53 = arith.truncf %52 : vector<64x128xf32> to vector<64x128xbf16>
    %c4 = arith.constant 4 : index
    %c0_49 = arith.constant 0 : index
    %c0_50 = arith.constant 0 : index
    %54 = vector.load %arg4[%c4, %c0_49, %c0_50] : memref<9x128x128xbf16, #tpu.memory_space<vmem>>, vector<1x128x128xbf16>
    %55 = vector.shape_cast %54 : vector<1x128x128xbf16> to vector<128x128xbf16>
    %cst_51 = arith.constant dense<0.000000e+00> : vector<64x128xf32>
    %56 = tpu.matmul %53, %55, %cst_51 {dimension_numbers = #tpu.dot_dimension_numbers<[1], [0], [0], [1], [0, 0, 1, 1], [], []>} : vector<64x128xbf16>, vector<128x128xbf16>, vector<64x128xf32> -> vector<64x128xf32>
    %57 = arith.addf %50, %56 : vector<64x128xf32>
    %c0_52 = arith.constant 0 : index
    %c1_53 = arith.constant 1 : index
    %c2_54 = arith.constant 2 : index
    %c0_55 = arith.constant 0 : index
    %58 = vector.load %arg7[%c0_52, %c1_53, %c2_54, %c0_55] : memref<1x10x10x128xf32, #tpu.memory_space<vmem>>, vector<1x8x8x128xf32>
    %59 = vector.shape_cast %58 : vector<1x8x8x128xf32> to vector<64x128xf32>
    %60 = arith.truncf %59 : vector<64x128xf32> to vector<64x128xbf16>
    %c5 = arith.constant 5 : index
    %c0_56 = arith.constant 0 : index
    %c0_57 = arith.constant 0 : index
    %61 = vector.load %arg4[%c5, %c0_56, %c0_57] : memref<9x128x128xbf16, #tpu.memory_space<vmem>>, vector<1x128x128xbf16>
    %62 = vector.shape_cast %61 : vector<1x128x128xbf16> to vector<128x128xbf16>
    %cst_58 = arith.constant dense<0.000000e+00> : vector<64x128xf32>
    %63 = tpu.matmul %60, %62, %cst_58 {dimension_numbers = #tpu.dot_dimension_numbers<[1], [0], [0], [1], [0, 0, 1, 1], [], []>} : vector<64x128xbf16>, vector<128x128xbf16>, vector<64x128xf32> -> vector<64x128xf32>
    %64 = arith.addf %57, %63 : vector<64x128xf32>
    %c0_59 = arith.constant 0 : index
    %c2_60 = arith.constant 2 : index
    %c0_61 = arith.constant 0 : index
    %c0_62 = arith.constant 0 : index
    %65 = vector.load %arg7[%c0_59, %c2_60, %c0_61, %c0_62] : memref<1x10x10x128xf32, #tpu.memory_space<vmem>>, vector<1x8x8x128xf32>
    %66 = vector.shape_cast %65 : vector<1x8x8x128xf32> to vector<64x128xf32>
    %67 = arith.truncf %66 : vector<64x128xf32> to vector<64x128xbf16>
    %c6 = arith.constant 6 : index
    %c0_63 = arith.constant 0 : index
    %c0_64 = arith.constant 0 : index
    %68 = vector.load %arg4[%c6, %c0_63, %c0_64] : memref<9x128x128xbf16, #tpu.memory_space<vmem>>, vector<1x128x128xbf16>
    %69 = vector.shape_cast %68 : vector<1x128x128xbf16> to vector<128x128xbf16>
    %cst_65 = arith.constant dense<0.000000e+00> : vector<64x128xf32>
    %70 = tpu.matmul %67, %69, %cst_65 {dimension_numbers = #tpu.dot_dimension_numbers<[1], [0], [0], [1], [0, 0, 1, 1], [], []>} : vector<64x128xbf16>, vector<128x128xbf16>, vector<64x128xf32> -> vector<64x128xf32>
    %71 = arith.addf %64, %70 : vector<64x128xf32>
    %c0_66 = arith.constant 0 : index
    %c2_67 = arith.constant 2 : index
    %c1_68 = arith.constant 1 : index
    %c0_69 = arith.constant 0 : index
    %72 = vector.load %arg7[%c0_66, %c2_67, %c1_68, %c0_69] : memref<1x10x10x128xf32, #tpu.memory_space<vmem>>, vector<1x8x8x128xf32>
    %73 = vector.shape_cast %72 : vector<1x8x8x128xf32> to vector<64x128xf32>
    %74 = arith.truncf %73 : vector<64x128xf32> to vector<64x128xbf16>
    %c7 = arith.constant 7 : index
    %c0_70 = arith.constant 0 : index
    %c0_71 = arith.constant 0 : index
    %75 = vector.load %arg4[%c7, %c0_70, %c0_71] : memref<9x128x128xbf16, #tpu.memory_space<vmem>>, vector<1x128x128xbf16>
    %76 = vector.shape_cast %75 : vector<1x128x128xbf16> to vector<128x128xbf16>
    %cst_72 = arith.constant dense<0.000000e+00> : vector<64x128xf32>
    %77 = tpu.matmul %74, %76, %cst_72 {dimension_numbers = #tpu.dot_dimension_numbers<[1], [0], [0], [1], [0, 0, 1, 1], [], []>} : vector<64x128xbf16>, vector<128x128xbf16>, vector<64x128xf32> -> vector<64x128xf32>
    %78 = arith.addf %71, %77 : vector<64x128xf32>
    %c0_73 = arith.constant 0 : index
    %c2_74 = arith.constant 2 : index
    %c2_75 = arith.constant 2 : index
    %c0_76 = arith.constant 0 : index
    %79 = vector.load %arg7[%c0_73, %c2_74, %c2_75, %c0_76] : memref<1x10x10x128xf32, #tpu.memory_space<vmem>>, vector<1x8x8x128xf32>
    %80 = vector.shape_cast %79 : vector<1x8x8x128xf32> to vector<64x128xf32>
    %81 = arith.truncf %80 : vector<64x128xf32> to vector<64x128xbf16>
    %c8 = arith.constant 8 : index
    %c0_77 = arith.constant 0 : index
    %c0_78 = arith.constant 0 : index
    %82 = vector.load %arg4[%c8, %c0_77, %c0_78] : memref<9x128x128xbf16, #tpu.memory_space<vmem>>, vector<1x128x128xbf16>
    %83 = vector.shape_cast %82 : vector<1x128x128xbf16> to vector<128x128xbf16>
    %cst_79 = arith.constant dense<0.000000e+00> : vector<64x128xf32>
    %84 = tpu.matmul %81, %83, %cst_79 {dimension_numbers = #tpu.dot_dimension_numbers<[1], [0], [0], [1], [0, 0, 1, 1], [], []>} : vector<64x128xbf16>, vector<128x128xbf16>, vector<64x128xf32> -> vector<64x128xf32>
    %85 = arith.addf %78, %84 : vector<64x128xf32>
    %86 = arith.truncf %85 : vector<64x128xf32> to vector<64x128xbf16>
    %c0_80 = arith.constant 0 : index
    %c0_81 = arith.constant 0 : index
    %87 = vector.load %arg5[%c0_80, %c0_81] : memref<64x128xbf16, #tpu.memory_space<vmem>>, vector<64x128xbf16>
    tpu.vector_store %arg5[%c0_80, %c0_81], %86 {strides = array<i32>} : memref<64x128xbf16, #tpu.memory_space<vmem>>, vector<64x128xbf16>,
    %cst_82 = arith.constant dense<0.000000e+00> : vector<128xf32>
    %88 = vector.multi_reduction <add>, %85, %cst_82 [0] : vector<64x128xf32> to vector<128xf32>
    %89 = vector.shape_cast %88 : vector<128xf32> to vector<1x128xf32>
    %c0_83 = arith.constant 0 : index
    %c0_84 = arith.constant 0 : index
    %90 = vector.load %arg6[%c0_83, %c0_84] : memref<8x128xf32, #tpu.memory_space<vmem>>, vector<1x128xf32>
    tpu.vector_store %arg6[%c0_83, %c0_84], %89 {strides = array<i32>} : memref<8x128xf32, #tpu.memory_space<vmem>>, vector<1x128xf32>,
    %91 = arith.mulf %85, %85 : vector<64x128xf32>
    %cst_85 = arith.constant dense<0.000000e+00> : vector<128xf32>
    %92 = vector.multi_reduction <add>, %91, %cst_85 [0] : vector<64x128xf32> to vector<128xf32>
    %93 = vector.shape_cast %92 : vector<128xf32> to vector<1x128xf32>
    %c1_86 = arith.constant 1 : index
    %c0_87 = arith.constant 0 : index
    %94 = vector.load %arg6[%c1_86, %c0_87] : memref<8x128xf32, #tpu.memory_space<vmem>>, vector<1x128xf32>
    tpu.vector_store %arg6[%c1_86, %c0_87], %93 {strides = array<i32>} : memref<8x128xf32, #tpu.memory_space<vmem>>, vector<1x128xf32>,
    return
  }
  func.func @transform_0(%arg0: i32) -> (i32, i32) {
    %c0_i32 = arith.constant 0 : i32
    %c0_i32_0 = arith.constant 0 : i32
    return %arg0, %c0_i32 : i32, i32
  }
  func.func @transform_1(%arg0: i32) -> (i32, i32) {
    %c0_i32 = arith.constant 0 : i32
    %c0_i32_0 = arith.constant 0 : i32
    %c0_i32_1 = arith.constant 0 : i32
    return %c0_i32, %c0_i32_0 : i32, i32
  }
  func.func @transform_2(%arg0: i32) -> (i32, i32) {
    %c0_i32 = arith.constant 0 : i32
    %c0_i32_0 = arith.constant 0 : i32
    %c0_i32_1 = arith.constant 0 : i32
    return %c0_i32, %c0_i32_0 : i32, i32
  }
  func.func @transform_3(%arg0: i32) -> (i32, i32, i32) {
    %c0_i32 = arith.constant 0 : i32
    %c0_i32_0 = arith.constant 0 : i32
    %c0_i32_1 = arith.constant 0 : i32
    %c0_i32_2 = arith.constant 0 : i32
    return %c0_i32, %c0_i32_0, %c0_i32_1 : i32, i32, i32
  }
  func.func @transform_4(%arg0: i32) -> (i32, i32) {
    %c0_i32 = arith.constant 0 : i32
    %c0_i32_0 = arith.constant 0 : i32
    return %arg0, %c0_i32 : i32, i32
  }
  func.func @transform_5(%arg0: i32) -> (i32, i32) {
    %c0_i32 = arith.constant 0 : i32
    %c0_i32_0 = arith.constant 0 : i32
    return %arg0, %c0_i32 : i32, i32
  }
}

module attributes {stable_mosaic.version = 11 : i64} {
  func.func @_k_gram_stats(%arg0: i32, %arg1: memref<64x128xbf16, #tpu.memory_space<vmem>>, %arg2: memref<1x128xf32, #tpu.memory_space<vmem>>, %arg3: memref<1x128xf32, #tpu.memory_space<vmem>>, %arg4: memref<128x128xf32, #tpu.memory_space<vmem>>, %arg5: memref<8x128xf32, #tpu.memory_space<vmem>>) attributes {dimension_semantics = [#tpu.dimension_semantics<parallel>], iteration_bounds = array<i64: 2>, scalar_prefetch = 0 : i64, scratch_operands = 0 : i64, tpu.core_type = #tpu.core_type<tc>, window_params = [{transform_indices = @transform_0, window_bounds = array<i64: 64, 128>}, {pipeline_mode = #tpu.pipeline_mode<synchronous>, transform_indices = @transform_1, window_bounds = array<i64: 1, 128>}, {pipeline_mode = #tpu.pipeline_mode<synchronous>, transform_indices = @transform_2, window_bounds = array<i64: 1, 128>}, {transform_indices = @transform_3, window_bounds = array<i64: 128, 128>}, {transform_indices = @transform_4, window_bounds = array<i64: 8, 128>}]} {
    %c0 = arith.constant 0 : index
    %c0_0 = arith.constant 0 : index
    %0 = vector.load %arg1[%c0, %c0_0] : memref<64x128xbf16, #tpu.memory_space<vmem>>, vector<64x128xbf16>
    %1 = arith.extf %0 : vector<64x128xbf16> to vector<64x128xf32>
    %c0_1 = arith.constant 0 : index
    %c0_2 = arith.constant 0 : index
    %2 = vector.load %arg2[%c0_1, %c0_2] : memref<1x128xf32, #tpu.memory_space<vmem>>, vector<1x128xf32>
    %3 = vector.broadcast %2 : vector<1x128xf32> to vector<64x128xf32>
    %4 = arith.mulf %1, %3 : vector<64x128xf32>
    %c0_3 = arith.constant 0 : index
    %c0_4 = arith.constant 0 : index
    %5 = vector.load %arg3[%c0_3, %c0_4] : memref<1x128xf32, #tpu.memory_space<vmem>>, vector<1x128xf32>
    %6 = vector.broadcast %5 : vector<1x128xf32> to vector<64x128xf32>
    %7 = arith.addf %4, %6 : vector<64x128xf32>
    %cst = arith.constant 0.000000e+00 : f32
    %8 = vector.broadcast %cst : f32 to vector<64x128xf32>
    %9 = arith.maximumf %7, %8 : vector<64x128xf32>
    %c64_i32 = arith.constant 64 : i32
    %10 = arith.muli %arg0, %c64_i32 : i32
    %11 = tpu.iota {dimensions = array<i32: 0>} : vector<64x128xi32>
    %12 = vector.broadcast %10 : i32 to vector<64x128xi32>
    %13 = arith.addi %12, %11 : vector<64x128xi32>
    %c128_i32 = arith.constant 128 : i32
    %14 = vector.broadcast %c128_i32 : i32 to vector<64x128xi32>
    %15 = arith.cmpi slt, %13, %14 : vector<64x128xi32>
    %cst_5 = arith.constant 0.000000e+00 : f32
    %16 = vector.broadcast %cst_5 : f32 to vector<64x128xf32>
    %17 = arith.select %15, %9, %16 : vector<64x128xi1>, vector<64x128xf32>
    %cst_6 = arith.constant dense<0.000000e+00> : vector<128xf32>
    %18 = vector.multi_reduction <add>, %17, %cst_6 [0] : vector<64x128xf32> to vector<128xf32>
    %19 = vector.shape_cast %18 : vector<128xf32> to vector<1x128xf32>
    %c0_7 = arith.constant 0 : index
    %c0_8 = arith.constant 0 : index
    %20 = vector.load %arg5[%c0_7, %c0_8] : memref<8x128xf32, #tpu.memory_space<vmem>>, vector<1x128xf32>
    tpu.vector_store %arg5[%c0_7, %c0_8], %19 {strides = array<i32>} : memref<8x128xf32, #tpu.memory_space<vmem>>, vector<1x128xf32>,
    %21 = arith.truncf %17 : vector<64x128xf32> to vector<64x128xbf16>
    %cst_9 = arith.constant dense<0.000000e+00> : vector<128x128xf32>
    %22 = tpu.matmul %21, %21, %cst_9 {dimension_numbers = #tpu.dot_dimension_numbers<[0], [0], [1], [1], [0, 1, 1, 1], [], []>} : vector<64x128xbf16>, vector<64x128xbf16>, vector<128x128xf32> -> vector<128x128xf32>
    %c0_10 = arith.constant 0 : index
    %c0_11 = arith.constant 0 : index
    %23 = vector.load %arg4[%c0_10, %c0_11] : memref<128x128xf32, #tpu.memory_space<vmem>>, vector<128x128xf32>
    tpu.vector_store %arg4[%c0_10, %c0_11], %22 {strides = array<i32>} : memref<128x128xf32, #tpu.memory_space<vmem>>, vector<128x128xf32>,
    return
  }
  func.func @transform_0(%arg0: i32) -> (i32, i32) {
    %c0_i32 = arith.constant 0 : i32
    %c0_i32_0 = arith.constant 0 : i32
    return %arg0, %c0_i32 : i32, i32
  }
  func.func @transform_1(%arg0: i32) -> (i32, i32) {
    %c0_i32 = arith.constant 0 : i32
    %c0_i32_0 = arith.constant 0 : i32
    %c0_i32_1 = arith.constant 0 : i32
    return %c0_i32, %c0_i32_0 : i32, i32
  }
  func.func @transform_2(%arg0: i32) -> (i32, i32) {
    %c0_i32 = arith.constant 0 : i32
    %c0_i32_0 = arith.constant 0 : i32
    %c0_i32_1 = arith.constant 0 : i32
    return %c0_i32, %c0_i32_0 : i32, i32
  }
  func.func @transform_3(%arg0: i32) -> (i32, i32) {
    %c0_i32 = arith.constant 0 : i32
    %c0_i32_0 = arith.constant 0 : i32
    return %arg0, %c0_i32 : i32, i32
  }
  func.func @transform_4(%arg0: i32) -> (i32, i32) {
    %c0_i32 = arith.constant 0 : i32
    %c0_i32_0 = arith.constant 0 : i32
    return %arg0, %c0_i32 : i32, i32
  }
}

module attributes {stable_mosaic.version = 11 : i64} {
  func.func @_k_conv3_out(%arg0: i32, %arg1: memref<64x128xbf16, #tpu.memory_space<vmem>>, %arg2: memref<1x128xf32, #tpu.memory_space<vmem>>, %arg3: memref<1x128xf32, #tpu.memory_space<vmem>>, %arg4: memref<128x128xbf16, #tpu.memory_space<vmem>>, %arg5: memref<1x128xf32, #tpu.memory_space<vmem>>, %arg6: memref<1x128xf32, #tpu.memory_space<vmem>>, %arg7: memref<64x128xf32, #tpu.memory_space<vmem>>, %arg8: memref<64x128xf32, #tpu.memory_space<vmem>>) attributes {dimension_semantics = [#tpu.dimension_semantics<parallel>], iteration_bounds = array<i64: 2>, scalar_prefetch = 0 : i64, scratch_operands = 0 : i64, tpu.core_type = #tpu.core_type<tc>, window_params = [{transform_indices = @transform_0, window_bounds = array<i64: 64, 128>}, {pipeline_mode = #tpu.pipeline_mode<synchronous>, transform_indices = @transform_1, window_bounds = array<i64: 1, 128>}, {pipeline_mode = #tpu.pipeline_mode<synchronous>, transform_indices = @transform_2, window_bounds = array<i64: 1, 128>}, {pipeline_mode = #tpu.pipeline_mode<synchronous>, transform_indices = @transform_3, window_bounds = array<i64: 128, 128>}, {pipeline_mode = #tpu.pipeline_mode<synchronous>, transform_indices = @transform_4, window_bounds = array<i64: 1, 128>}, {pipeline_mode = #tpu.pipeline_mode<synchronous>, transform_indices = @transform_5, window_bounds = array<i64: 1, 128>}, {transform_indices = @transform_6, window_bounds = array<i64: 64, 128>}, {transform_indices = @transform_7, window_bounds = array<i64: 64, 128>}]} {
    %c0 = arith.constant 0 : index
    %c0_0 = arith.constant 0 : index
    %0 = vector.load %arg1[%c0, %c0_0] : memref<64x128xbf16, #tpu.memory_space<vmem>>, vector<64x128xbf16>
    %1 = arith.extf %0 : vector<64x128xbf16> to vector<64x128xf32>
    %c0_1 = arith.constant 0 : index
    %c0_2 = arith.constant 0 : index
    %2 = vector.load %arg2[%c0_1, %c0_2] : memref<1x128xf32, #tpu.memory_space<vmem>>, vector<1x128xf32>
    %3 = vector.broadcast %2 : vector<1x128xf32> to vector<64x128xf32>
    %4 = arith.mulf %1, %3 : vector<64x128xf32>
    %c0_3 = arith.constant 0 : index
    %c0_4 = arith.constant 0 : index
    %5 = vector.load %arg3[%c0_3, %c0_4] : memref<1x128xf32, #tpu.memory_space<vmem>>, vector<1x128xf32>
    %6 = vector.broadcast %5 : vector<1x128xf32> to vector<64x128xf32>
    %7 = arith.addf %4, %6 : vector<64x128xf32>
    %cst = arith.constant 0.000000e+00 : f32
    %8 = vector.broadcast %cst : f32 to vector<64x128xf32>
    %9 = arith.maximumf %7, %8 : vector<64x128xf32>
    %10 = arith.truncf %9 : vector<64x128xf32> to vector<64x128xbf16>
    %c0_5 = arith.constant 0 : index
    %c0_6 = arith.constant 0 : index
    %11 = vector.load %arg4[%c0_5, %c0_6] : memref<128x128xbf16, #tpu.memory_space<vmem>>, vector<128x128xbf16>
    %cst_7 = arith.constant dense<0.000000e+00> : vector<64x128xf32>
    %12 = tpu.matmul %10, %11, %cst_7 {dimension_numbers = #tpu.dot_dimension_numbers<[1], [0], [0], [1], [0, 0, 1, 1], [], []>} : vector<64x128xbf16>, vector<128x128xbf16>, vector<64x128xf32> -> vector<64x128xf32>
    %c0_8 = arith.constant 0 : index
    %c0_9 = arith.constant 0 : index
    %13 = vector.load %arg5[%c0_8, %c0_9] : memref<1x128xf32, #tpu.memory_space<vmem>>, vector<1x128xf32>
    %14 = vector.broadcast %13 : vector<1x128xf32> to vector<64x128xf32>
    %15 = arith.mulf %12, %14 : vector<64x128xf32>
    %c0_10 = arith.constant 0 : index
    %c0_11 = arith.constant 0 : index
    %16 = vector.load %arg6[%c0_10, %c0_11] : memref<1x128xf32, #tpu.memory_space<vmem>>, vector<1x128xf32>
    %17 = vector.broadcast %16 : vector<1x128xf32> to vector<64x128xf32>
    %18 = arith.addf %15, %17 : vector<64x128xf32>
    %c0_12 = arith.constant 0 : index
    %c0_13 = arith.constant 0 : index
    %19 = vector.load %arg7[%c0_12, %c0_13] : memref<64x128xf32, #tpu.memory_space<vmem>>, vector<64x128xf32>
    %20 = arith.addf %18, %19 : vector<64x128xf32>
    %cst_14 = arith.constant 0.000000e+00 : f32
    %21 = vector.broadcast %cst_14 : f32 to vector<64x128xf32>
    %22 = arith.maximumf %20, %21 : vector<64x128xf32>
    %c0_15 = arith.constant 0 : index
    %c0_16 = arith.constant 0 : index
    %23 = vector.load %arg8[%c0_15, %c0_16] : memref<64x128xf32, #tpu.memory_space<vmem>>, vector<64x128xf32>
    tpu.vector_store %arg8[%c0_15, %c0_16], %22 {strides = array<i32>} : memref<64x128xf32, #tpu.memory_space<vmem>>, vector<64x128xf32>,
    return
  }
  func.func @transform_0(%arg0: i32) -> (i32, i32) {
    %c0_i32 = arith.constant 0 : i32
    %c0_i32_0 = arith.constant 0 : i32
    return %arg0, %c0_i32 : i32, i32
  }
  func.func @transform_1(%arg0: i32) -> (i32, i32) {
    %c0_i32 = arith.constant 0 : i32
    %c0_i32_0 = arith.constant 0 : i32
    %c0_i32_1 = arith.constant 0 : i32
    return %c0_i32, %c0_i32_0 : i32, i32
  }
  func.func @transform_2(%arg0: i32) -> (i32, i32) {
    %c0_i32 = arith.constant 0 : i32
    %c0_i32_0 = arith.constant 0 : i32
    %c0_i32_1 = arith.constant 0 : i32
    return %c0_i32, %c0_i32_0 : i32, i32
  }
  func.func @transform_3(%arg0: i32) -> (i32, i32) {
    %c0_i32 = arith.constant 0 : i32
    %c0_i32_0 = arith.constant 0 : i32
    %c0_i32_1 = arith.constant 0 : i32
    return %c0_i32, %c0_i32_0 : i32, i32
  }
  func.func @transform_4(%arg0: i32) -> (i32, i32) {
    %c0_i32 = arith.constant 0 : i32
    %c0_i32_0 = arith.constant 0 : i32
    %c0_i32_1 = arith.constant 0 : i32
    return %c0_i32, %c0_i32_0 : i32, i32
  }
  func.func @transform_5(%arg0: i32) -> (i32, i32) {
    %c0_i32 = arith.constant 0 : i32
    %c0_i32_0 = arith.constant 0 : i32
    %c0_i32_1 = arith.constant 0 : i32
    return %c0_i32, %c0_i32_0 : i32, i32
  }
  func.func @transform_6(%arg0: i32) -> (i32, i32) {
    %c0_i32 = arith.constant 0 : i32
    %c0_i32_0 = arith.constant 0 : i32
    return %arg0, %c0_i32 : i32, i32
  }
  func.func @transform_7(%arg0: i32) -> (i32, i32) {
    %c0_i32 = arith.constant 0 : i32
    %c0_i32_0 = arith.constant 0 : i32
    return %arg0, %c0_i32 : i32, i32
  }
}

</mosaic_0001>

<bundles_post_ra>
// kernel: bottleneck_forward.4
= control target key start
LH: loop header
LB: loop body
LE: loop exit
PB: predicated region body
PF: predicated region fallthrough
CT: control target
= control target key end

     0   :  { %s564_s12 = smov 0   ;;  %s617_s0 = inlined_call_operand.vmem [shape: f32[128,128], index: 0, kind: input, shape index: {}]   ;;  %s618_s1 = inlined_call_operand.vmem [shape: bf16[128,128], index: 1, kind: input, shape index: {}]   ;;  %s619_s2 = inlined_call_operand.vmem [shape: bf16[128,128], index: 2, kind: output, shape index: {0}]   ;;  %s620_s3 = inlined_call_operand.vmem [shape: f32[16,128], index: 3, kind: output, shape index: {1}]  }
   0x1 LB: > { %s570_s13 = sadd.s32 4294967295, %s542_s12   ;;  %p433_p0 = scmp.ge.s32.totalorder %s542_s12, 1  ;;  %s542_s12 = sphi %s564_s12, %s14_s12  }
   0x2   : > { %p141_p1 = scmp.lt.s32.totalorder %s542_s12, 3 }
   0x4   : > { %p142_p2 = pnand %p433_p0, %p141_p1 }
   0x5   : > { %s434_s20 = sshll.u32 (!%p142_p2), %s570_s13, 3  ;;  %p181_p4 = scmp.lt.s32.totalorder (!%p142_p2), %s570_s13, 1 }
   0x6   : > { %145 = sbr.rel (%p142_p2) target bundleno = 206 (0xce), region = 28  ;;  %p170_p3 = scmp.lt.s32.totalorder (!%p142_p2), %s434_s20, 15 }
   0xb   : > { %v480_v0 = vld [vmem:[%s618_s1 + $0x38] sm:$0xff]  ;;  %v479_v1 = vld [vmem:[%s618_s1 + $0x30] sm:$0xff]  ;;  %v478_v2 = vld [vmem:[%s618_s1 + $0x28] sm:$0xff]  ;;  %s622_s20 = smov (!%p170_p3, %s434_s20), 15  ;;  %s624_s13 = smov (!%p181_p4, %s570_s13), 1 }
   0xc   : > { %261 = vmatpush.bf16.msra.mxu0 %v480_v0  ;;  %504 = vmatpush.bf16.msra.mxu1 %v480_v0  ;;  %v477_v3 = vld [vmem:[%s618_s1 + $0x20] sm:$0xff]  ;;  %v476_v4 = vld [vmem:[%s618_s1 + $0x18] sm:$0xff]  ;;  %v475_v5 = vld [vmem:[%s618_s1 + $0x10] sm:$0xff]  ;;  %s435_s27 = sshll.u32 %s622_s20, 3  ;;  %s437_s8 = sshll.u32 %s622_s20, 2 }
   0xd   : > { %505 = vmatpush.bf16.msra.mxu2 %v480_v0  ;;  %506 = vmatpush.bf16.msra.mxu3 %v480_v0  ;;  %v474_v6 = vld [vmem:[%s618_s1 + $0x8] sm:$0xff]  ;;  %s173_s5 = scalar_lea.vmem %s617_s0, %s435_s27  ;;  %v473_v7 = vld [vmem:[%s618_s1] sm:$0xff]  ;;  %s179_s11 = scalar_lea.vmem %s619_s2, %s437_s8 }
   0xe   : > { %v185_v8 = vld [vmem:[%s173_s5] sm:$0xff]  ;;  %v186_v9 = vld [vmem:[%s173_s5 + $0x8] sm:$0xff]  ;;  %v187_v10 = vld [vmem:[%s173_s5 + $0x10] sm:$0xff]  ;;  %s438_s14 = sshll.u32 %s624_s13, 3 }
   0xf   : > { %v188_v11 = vld [vmem:[%s173_s5 + $0x18] sm:$0xff]  ;;  %v189_v12 = vld [vmem:[%s173_s5 + $0x20] sm:$0xff]  ;;  %v190_v13 = vld [vmem:[%s173_s5 + $0x28] sm:$0xff]  ;;  %v193_v16 = vpack.c.bf16 %v186_v9, %v185_v8  ;;  %s184_s17 = scalar_lea.vmem %s620_s3, %s438_s14 }
  0x10   : > { %262 = vmatpush.bf16.msra.mxu0 %v479_v1  ;;  %507 = vmatpush.bf16.msra.mxu1 %v479_v1  ;;  %v191_v14 = vld [vmem:[%s173_s5 + $0x30] sm:$0xff]  ;;  %v192_v15 = vld [vmem:[%s173_s5 + $0x38] sm:$0xff]  ;;  %v194_v17 = vpack.c.bf16 %v188_v11, %v187_v10  ;;  %v195_v18 = vpack.c.bf16 %v190_v13, %v189_v12 }
  0x11   : > { %508 = vmatpush.bf16.msra.mxu2 %v479_v1  ;;  %509 = vmatpush.bf16.msra.mxu3 %v479_v1  ;;  %v196_v19 = vpack.c.bf16 %v192_v15, %v191_v14 }
  0x14   : > { %263 = vmatpush.bf16.msra.mxu0 %v478_v2  ;;  %510 = vmatpush.bf16.msra.mxu1 %v478_v2 }
  0x15   : > { %511 = vmatpush.bf16.msra.mxu2 %v478_v2  ;;  %512 = vmatpush.bf16.msra.mxu3 %v478_v2 }
  0x18   : > { %264 = vmatpush.bf16.msra.mxu0 %v477_v3  ;;  %513 = vmatpush.bf16.msra.mxu1 %v477_v3 }
  0x19   : > { %514 = vmatpush.bf16.msra.mxu2 %v477_v3  ;;  %515 = vmatpush.bf16.msra.mxu3 %v477_v3 }
  0x1c   : > { %265 = vmatpush.bf16.msra.mxu0 %v476_v4  ;;  %516 = vmatpush.bf16.msra.mxu1 %v476_v4 }
  0x1d   : > { %517 = vmatpush.bf16.msra.mxu2 %v476_v4  ;;  %518 = vmatpush.bf16.msra.mxu3 %v476_v4 }
  0x20   : > { %266 = vmatpush.bf16.msra.mxu0 %v475_v5  ;;  %519 = vmatpush.bf16.msra.mxu1 %v475_v5 }
  0x21   : > { %520 = vmatpush.bf16.msra.mxu2 %v475_v5  ;;  %521 = vmatpush.bf16.msra.mxu3 %v475_v5 }
  0x24   : > { %267 = vmatpush.bf16.msra.mxu0 %v474_v6  ;;  %522 = vmatpush.bf16.msra.mxu1 %v474_v6 }
  0x25   : > { %523 = vmatpush.bf16.msra.mxu2 %v474_v6  ;;  %524 = vmatpush.bf16.msra.mxu3 %v474_v6 }
  0x28   : > { %268 = vmatpush.bf16.msra.mxu0 %v473_v7  ;;  %525 = vmatpush.bf16.msra.mxu1 %v473_v7 }
  0x29   : > { %526 = vmatpush.bf16.msra.mxu2 %v473_v7  ;;  %527 = vmatpush.bf16.msra.mxu3 %v473_v7 }
  0x2b   : > { %269 = vmatmul.bf16.vlgmr.msra.gmra.mxu0 %v193_v16  ;;  %274 = vmatmul.bf16.vlgmr.msra.gmra.mxu1 %v194_v17 }
  0x2c   : > { %279 = vmatmul.bf16.vlgmr.msra.gmra.mxu2 %v195_v18  ;;  %284 = vmatmul.bf16.vlgmr.msra.gmra.mxu3 %v196_v19 }
  0xa8   : > { %v270_v20 = vpop.f32.mrf.mxu0  ;;  %v275_v21 = vpop.f32.mrf.mxu1 }
  0xa9   : > { %v320_v24 = vmul.f32 %v270_v20, %v270_v20  ;;  %v322_v31 = vmul.f32 %v275_v21, %v275_v21 }
  0xaf   : > { %v280_v22 = vpop.f32.mrf.mxu2  ;;  %v285_v23 = vpop.f32.mrf.mxu3 }
  0xb0   : > { %v272_v25 = vpop.f32.mrf.mxu0  ;;  %v277_v26 = vpop.f32.mrf.mxu1  ;;  %v324_v37 = vmul.f32 %v280_v22, %v280_v22  ;;  %v326_v47 = vmul.f32 %v285_v23, %v285_v23 }
  0xb1   : > { %v484_v27 = vpack.c.bf16 %v272_v25, %v270_v20  ;;  %v306_v28 = vadd.f32 %v272_v25, %v270_v20  ;;  %v321_v29 = vmul.f32 %v272_v25, %v272_v25  ;;  %v489_v30 = vpack.c.bf16 %v277_v26, %v275_v21 }
  0xb2   : > { %v323_v35 = vmul.f32 %v277_v26, %v277_v26 }
  0xb3   : > { %485 = vst [vmem:[%s179_s11] sm:$0xff] %v484_v27   ;;  %v328_v32 = vadd.f32 %v321_v29, %v320_v24  ;;  %v307_v33 = vadd.f32 %v306_v28, %v275_v21 }
  0xb4   : > { %501 = vst [vmem:[%s179_s11 + $0x8] sm:$0xff] %v489_v30  }
  0xb5   : > { %v308_v34 = vadd.f32 %v307_v33, %v277_v26  ;;  %v329_v36 = vadd.f32 %v328_v32, %v322_v31 }
  0xb7   : > { %v330_v38 = vadd.f32 %v329_v36, %v323_v35  ;;  %v282_v39 = vpop.f32.mrf.mxu2  ;;  %v309_v40 = vadd.f32 %v308_v34, %v280_v22  ;;  %v287_v41 = vpop.f32.mrf.mxu3 }
  0xb8   : > { %v494_v42 = vpack.c.bf16 %v282_v39, %v280_v22  ;;  %v499_v43 = vpack.c.bf16 %v287_v41, %v285_v23  ;;  %v325_v45 = vmul.f32 %v282_v39, %v282_v39  ;;  %v327_v51 = vmul.f32 %v287_v41, %v287_v41 }
  0xb9   : > { %v310_v44 = vadd.f32 %v309_v40, %v282_v39  ;;  %v331_v46 = vadd.f32 %v330_v38, %v324_v37 }
  0xba   : > { %502 = vst [vmem:[%s179_s11 + $0x10] sm:$0xff] %v494_v42  }
  0xbb   : > { %v332_v48 = vadd.f32 %v331_v46, %v325_v45  ;;  %503 = vst [vmem:[%s179_s11 + $0x18] sm:$0xff] %v499_v43   ;;  %v311_v49 = vadd.f32 %v310_v44, %v285_v23 }
  0xbd   : > { %v312_v50 = vadd.f32 %v311_v49, %v287_v41  ;;  %v333_v52 = vadd.f32 %v332_v48, %v326_v47 }
  0xbf   : > { %v313_v53 = vrot.slane %v312_v50, 4  ;;  %v334_v54 = vadd.f32 %v333_v52, %v327_v51 }
  0xc1   : > { %v314_v55 = vadd.f32 %v313_v53, %v312_v50  ;;  %v335_v56 = vrot.slane %v334_v54, 4 }
  0xc3   : > { %v315_v57 = vrot.slane %v314_v55, 2  ;;  %v336_v58 = vadd.f32 %v335_v56, %v334_v54 }
  0xc5   : > { %v316_v59 = vadd.f32 %v315_v57, %v314_v55  ;;  %v337_v60 = vrot.slane %v336_v58, 2 }
  0xc7   : > { %v317_v61 = vrot.slane %v316_v59, 1  ;;  %v338_v62 = vadd.f32 %v337_v60, %v336_v58 }
  0xc9   : > { %v318_v63 = vadd.f32 %v317_v61, %v316_v59  ;;  %v339_v0 = vrot.slane %v338_v62, 1 }
  0xcb   : > { %319 = vst [vmem:[%s184_s17] sm:$0x1] %v318_v63  ;;  %v340_v1 = vadd.f32 %v339_v0, %v338_v62 }
  0xcd   : > { %341 = vst [vmem:[%s184_s17 + $0x1] sm:$0x1] %v340_v1 }
  0xce PF: > { %s14_s12 = sadd.s32 1, %s542_s12  }
  0xcf   : > { %p11_p5 = scmp.ge.s32.totalorder %s14_s12, 4  }
  0xd1   :  { %13 = sbr.rel (!%p11_p5) target bundleno = 1 (0x1), region = 70 }

// kernel: bottleneck_forward.6
= control target key start
LH: loop header
LB: loop body
LE: loop exit
PB: predicated region body
PF: predicated region fallthrough
CT: control target
= control target key end

     0   :  { %s615_s15 = smov 0   ;;  %s749_s0 = inlined_call_operand.vmem [shape: bf16[128,128], index: 0, kind: input, shape index: {}]   ;;  %s750_s1 = inlined_call_operand.vmem [shape: f32[1,128], index: 1, kind: input, shape index: {}]   ;;  %s751_s2 = inlined_call_operand.vmem [shape: f32[1,128], index: 2, kind: input, shape index: {}]   ;;  %s752_s3 = inlined_call_operand.vmem [shape: f32[256,128], index: 3, kind: output, shape index: {0}]   ;;  %s753_s4 = inlined_call_operand.vmem [shape: f32[16,128], index: 4, kind: output, shape index: {1}]  }
   0x1 LB: > { %s621_s16 = sadd.s32 4294967295, %s588_s15   ;;  %p511_p0 = scmp.ge.s32.totalorder %s588_s15, 1  ;;  %s588_s15 = sphi %s615_s15, %s15_s15  }
   0x2   : > { %p166_p1 = scmp.lt.s32.totalorder %s588_s15, 3 }
   0x4   : > { %p167_p2 = pnand %p511_p0, %p166_p1 }
   0x5   : > { %s512_s17 = sshll.u32 (!%p167_p2), %s621_s16, 3  ;;  %s517_s18 = sshll.u32 (!%p167_p2), %s621_s16, 6 }
   0x6   : > { %170 = sbr.rel (%p167_p2) target bundleno = 452 (0x1c4), region = 32  ;;  %p197_p3 = scmp.lt.s32.totalorder (!%p167_p2), %s512_s17, 15 }
   0x7   : > { %p208_p4 = scmp.lt.s32.totalorder (!%p167_p2), %s621_s16, 1  ;;  %s514_s6 = sshll.u32 (!%p167_p2), %s621_s16, 4 }
   0x8   : > { %p203_p5 = scmp.lt.s32.totalorder (!%p167_p2), %s514_s6, 31 }
   0xb   : > { %v262_v0 = vlaneseq  ;;  %s755_s17 = smov (!%p197_p3, %s512_s17), 15  ;;  %v580_v3 = vld [vmem:[%s750_s1] ss:$0 sm:$0xff]  ;;  %v638_v4 = vstv %s517_s18  ;;  %vm330_vm12 = vcmask 523264   ;;  %s757_s6 = smov (!%p203_p5, %s514_s6), 31 }
   0xc   : > { %s513_s19 = sshll.u32 %s755_s17, 2  ;;  %v581_v11 = vld [vmem:[%s751_s2] ss:$0 sm:$0xff]  ;;  %s515_s7 = sshll.u32 %s757_s6, 3 }
   0xd   : > { %v627_v1 = vshrl.u32 %v262_v0, 7  ;;  %s633_s22 = scalar_lea.vmem %s749_s0, %s513_s19  ;;  %s728_s10 = scalar_lea.vmem %s752_s3, %s515_s7 }
   0xe   : > { %v541_v5 = vld [vmem:[%s633_s22] sm:$0xff]   ;;  %v556_v6 = vld [vmem:[%s633_s22 + $0x8] sm:$0xff]   ;;  %v557_v8 = vld [vmem:[%s633_s22 + $0x10] sm:$0xff]   ;;  %s209_s27 = scalar_select %p208_p4, %s621_s16, 1 }
   0xf   : > { %v264_v2 = vadd.s32 8, %v627_v1  ;;  %v265_v7 = vadd.s32 16, %v627_v1  ;;  %v542_v9 = vunpack.c.l.bf16 %v541_v5  ;;  %v543_v10 = vunpack.c.h.bf16 %v541_v5  ;;  %v558_v45 = vld [vmem:[%s633_s22 + $0x18] sm:$0xff]  }
  0x10   : > { %v546_v12 = vunpack.c.l.bf16 %v556_v6  ;;  %v649_v13 = vadd.s32 %v638_v4, %v627_v1  ;;  %v547_v15 = vunpack.c.h.bf16 %v556_v6  ;;  %v550_v16 = vunpack.c.l.bf16 %v557_v8  ;;  %s516_s28 = sshll.u32 %s209_s27, 3 }
  0x11   : > { %v652_v14 = vadd.s32 %v638_v4, %v264_v2  ;;  %v233_v17 = vmul.f32 %v580_v3, %v542_v9  ;;  %v234_v18 = vmul.f32 %v580_v3, %v543_v10  ;;  %v266_v21 = vadd.s32 24, %v627_v1  ;;  %s211_s5 = scalar_lea.vmem %s753_s4, %s516_s28 }
  0x12   : > { %v235_v19 = vmul.f32 %v580_v3, %v546_v12  ;;  %v236_v20 = vmul.f32 %v580_v3, %v547_v15  ;;  %v656_v22 = vadd.s32 %v638_v4, %v265_v7  ;;  %vm280_vm0 = vcmp.lt.s32.totalorder %v649_v13, 128 }
  0x13   : > { %v658_v23 = vadd.f32 %v581_v11, %v233_v17  ;;  %v660_v24 = vadd.f32 %v581_v11, %v234_v18  ;;  %vm281_vm1 = vcmp.lt.s32.totalorder %v652_v14, 128  ;;  %v551_v26 = vunpack.c.h.bf16 %v557_v8 }
  0x14   : > { %v662_v25 = vadd.f32 %v581_v11, %v235_v19  ;;  %v237_v27 = vmul.f32 %v580_v3, %v550_v16  ;;  %v248_v30 = vadd.f32 %v581_v11, %v236_v20  ;;  %v670_v32 = vadd.s32 %v638_v4, %v266_v21  ;;  %vm527_vm11 = vmpackc.low %vm281_vm1, %vm280_vm0 }
  0x15   : > { %v253_v28 = vmax.f32 %v658_v23, 0.0  ;;  %v254_v29 = vmax.f32 %v660_v24, 0.0  ;;  %vm282_vm2 = vcmp.lt.s32.totalorder %v656_v22, 128  ;;  %v267_v33 = vadd.s32 32, %v627_v1 }
  0x16   : > { %v255_v31 = vmax.f32 %v662_v25, 0.0  ;;  %v238_v38 = vmul.f32 %v580_v3, %v551_v26  ;;  %v256_v39 = vmax.f32 %v248_v30, 0.0  ;;  %v249_v41 = vadd.f32 %v581_v11, %v237_v27 }
  0x17   : > { %v288_v34 = vsel %vm280_vm0, %v253_v28, 0.0  ;;  %v289_v35 = vsel %vm281_vm1, %v254_v29, 0.0  ;;  %vm283_vm3 = vcmp.lt.s32.totalorder %v670_v32, 128  ;;  %v268_v43 = vadd.s32 40, %v627_v1 }
  0x18   : > { %v310_v36 = vpack.c.bf16 %v289_v35, %v288_v34  ;;  %v296_v37 = vadd.f32 %v289_v35, %v288_v34  ;;  %v290_v40 = vsel %vm282_vm2, %v255_v31, 0.0  ;;  %v276_v44 = vadd.s32 %v638_v4, %v267_v33  ;;  %vm524_vm10 = vmpackc.low %vm283_vm3, %vm282_vm2 }
  0x19   : > { %v554_v46 = vunpack.c.l.bf16 %v558_v45  ;;  %v555_v47 = vunpack.c.h.bf16 %v558_v45  ;;  %v250_v48 = vadd.f32 %v581_v11, %v238_v38  ;;  %v291_v49 = vsel %vm283_vm3, %v256_v39, 0.0 }
  0x1a   : > { %314 = vxpose.xlu0.c.b16.start [1/4] (short) %v310_v36, 128  ;;  %v297_v42 = vadd.f32 %v296_v37, %v290_v40  ;;  %v257_v50 = vmax.f32 %v249_v41, 0.0  ;;  %v277_v54 = vadd.s32 %v638_v4, %v268_v43  ;;  %vm284_vm4 = vcmp.lt.s32.totalorder %v276_v44, 128 }
  0x1b   : > { %v239_v51 = vmul.f32 %v580_v3, %v554_v46  ;;  %v240_v52 = vmul.f32 %v580_v3, %v555_v47  ;;  %v269_v55 = vadd.s32 48, %v627_v1  ;;  %v270_v56 = vadd.s32 56, %v627_v1 }
  0x1c   : > { %v298_v53 = vadd.f32 %v297_v42, %v291_v49  ;;  %v258_v57 = vmax.f32 %v250_v48, 0.0  ;;  %v292_v58 = vsel %vm284_vm4, %v257_v50, 0.0  ;;  %vm285_vm5 = vcmp.lt.s32.totalorder %v277_v54, 128 }
  0x1d   : > { %v251_v59 = vadd.f32 %v581_v11, %v239_v51  ;;  %v252_v60 = vadd.f32 %v581_v11, %v240_v52  ;;  %v278_v62 = vadd.s32 %v638_v4, %v269_v55  ;;  %v279_v63 = vadd.s32 %v638_v4, %v270_v56  ;;  %vm521_vm9 = vmpackc.low %vm285_vm5, %vm284_vm4 }
  0x1e   : > { %v299_v61 = vadd.f32 %v298_v53, %v292_v58  ;;  %v293_v0 = vsel %vm285_vm5, %v258_v57, 0.0  ;;  %v311_v5 = vpack.c.bf16 %v291_v49, %v290_v40  ;;  %v522_v9 = vpack.c.bf16 %v258_v57, %v257_v50 }
  0x1f   : > { %v259_v2 = vmax.f32 %v251_v59, 0.0  ;;  %v260_v3 = vmax.f32 %v252_v60, 0.0  ;;  %vm286_vm6 = vcmp.lt.s32.totalorder %v278_v62, 128  ;;  %vm287_vm7 = vcmp.lt.s32.totalorder %v279_v63, 128 }
  0x20   : > { %v300_v6 = vadd.f32 %v299_v61, %v293_v0  ;;  %vm518_vm8 = vmpackc.low %vm287_vm7, %vm286_vm6  ;;  %v525_v12 = vpack.c.bf16 %v256_v39, %v255_v31  ;;  %v528_v17 = vpack.c.bf16 %v254_v29, %v253_v28  ;;  %v312_v19 = vpack.c.bf16 %v293_v0, %v292_v58 }
  0x21   : > { %v519_v1 = vpack.c.bf16 %v260_v3, %v259_v2  ;;  %v294_v7 = vsel %vm286_vm6, %v259_v2, 0.0  ;;  %v295_v10 = vsel %vm287_vm7, %v260_v3, 0.0 }
  0x22   : > { %v301_v8 = vadd.f32 %v300_v6, %v294_v7  ;;  %v313_v13 = vpack.c.bf16 %v295_v10, %v294_v7 }
  0x23   : > { %520 = vmatpush.bf16.msk.msra.mxu0 %vm518_vm8, %v519_v1  ;;  %559 = vmatpush.bf16.msk.msra.mxu1 %vm518_vm8, %v519_v1 }
  0x24   : > { %v302_v4 = vadd.f32 %v301_v8, %v295_v10  ;;  %560 = vmatpush.bf16.msk.msra.mxu2 %vm518_vm8, %v519_v1  ;;  %561 = vmatpush.bf16.msk.msra.mxu3 %vm518_vm8, %v519_v1 }
  0x26   : > { %v303_v11 = vrot.slane %v302_v4, 4 }
  0x27   : > { %523 = vmatpush.bf16.msk.msra.mxu0 %vm521_vm9, %v522_v9  ;;  %562 = vmatpush.bf16.msk.msra.mxu1 %vm521_vm9, %v522_v9 }
  0x28   : > { %v304_v15 = vadd.f32 %v303_v11, %v302_v4  ;;  %563 = vmatpush.bf16.msk.msra.mxu2 %vm521_vm9, %v522_v9  ;;  %564 = vmatpush.bf16.msk.msra.mxu3 %vm521_vm9, %v522_v9 }
  0x2a   : > { %315 = vxpose.xlu0.c.b16.cont [2/4] (short) %v311_v5, 128  ;;  %v305_v16 = vrot.slane %v304_v15, 2 }
  0x2b   : > { %526 = vmatpush.bf16.msk.msra.mxu0 %vm524_vm10, %v525_v12  ;;  %565 = vmatpush.bf16.msk.msra.mxu1 %vm524_vm10, %v525_v12 }
  0x2c   : > { %v306_v18 = vadd.f32 %v305_v16, %v304_v15  ;;  %566 = vmatpush.bf16.msk.msra.mxu2 %vm524_vm10, %v525_v12  ;;  %567 = vmatpush.bf16.msk.msra.mxu3 %vm524_vm10, %v525_v12 }
  0x2e   : > { %v307_v20 = vrot.slane %v306_v18, 1 }
  0x2f   : > { %529 = vmatpush.bf16.msk.msra.mxu0 %vm527_vm11, %v528_v17  ;;  %568 = vmatpush.bf16.msk.msra.mxu1 %vm527_vm11, %v528_v17 }
  0x30   : > { %v308_v21 = vadd.f32 %v307_v20, %v306_v18  ;;  %569 = vmatpush.bf16.msk.msra.mxu2 %vm527_vm11, %v528_v17  ;;  %570 = vmatpush.bf16.msk.msra.mxu3 %vm527_vm11, %v528_v17 }
  0x32   : > { %309 = vst [vmem:[%s211_s5] sm:$0x1] %v308_v21 }
  0x3a   : > { %316 = vxpose.xlu0.c.b16.cont [3/4] (short) %v312_v19, 128 }
  0x4a   : > { %317 = vxpose.xlu0.c.b16.end [4/4] (short) %v313_v13, 128 }
  0xc6   : > { %v322_v14 = vpop.trf.xlu0 }
  0xc7   : > { %530 = vmatmul.msk.bf16.vlgmr.msra.gmra.mxu0 %vm330_vm12, %v322_v14 }
  0xd6   : > { %v323_v22 = vpop.trf.xlu0 }
  0xd7   : > { %531 = vmatmul.msk.bf16.gmra.mxu0 %vm330_vm12, %v323_v22 }
  0xe6   : > { %v324_v23 = vpop.trf.xlu0 }
  0xe7   : > { %532 = vmatmul.msk.bf16.vlgmr.msra.gmra.mxu1 %vm330_vm12, %v324_v23 }
  0xf6   : > { %v325_v24 = vpop.trf.xlu0 }
  0xf7   : > { %533 = vmatmul.msk.bf16.gmra.mxu1 %vm330_vm12, %v325_v24 }
 0x106   : > { %v326_v25 = vpop.trf.xlu0 }
 0x107   : > { %534 = vmatmul.msk.bf16.vlgmr.msra.gmra.mxu2 %vm330_vm12, %v326_v25 }
 0x116   : > { %v327_v26 = vpop.trf.xlu0 }
 0x117   : > { %535 = vmatmul.msk.bf16.gmra.mxu2 %vm330_vm12, %v327_v26 }
 0x126   : > { %v328_v27 = vpop.trf.xlu0 }
 0x127   : > { %536 = vmatmul.msk.bf16.vlgmr.msra.gmra.mxu3 %vm330_vm12, %v328_v27 }
 0x136   : > { %v329_v28 = vpop.trf.xlu0 }
 0x137   : > { %537 = vmatmul.msk.bf16.gmra.mxu3 %vm330_vm12, %v329_v28 }
 0x144   : > { %v364_v29 = vpop.f32.mrf.mxu0 }
 0x145   : > { %404 = vst [vmem:[%s728_s10] sm:$0xff] %v364_v29 }
 0x14c   : > { %v366_v30 = vpop.f32.mrf.mxu0 }
 0x14d   : > { %405 = vst [vmem:[%s728_s10 + $0x8] sm:$0xff] %v366_v30 }
 0x154   : > { %v369_v31 = vpop.f32.mrf.mxu0 }
 0x155   : > { %406 = vst [vmem:[%s728_s10 + $0x10] sm:$0xff] %v369_v31 }
 0x15c   : > { %v371_v32 = vpop.f32.mrf.mxu0 }
 0x15d   : > { %407 = vst [vmem:[%s728_s10 + $0x18] sm:$0xff] %v371_v32 }
 0x164   : > { %v374_v33 = vpop.f32.mrf.mxu1 }
 0x165   : > { %408 = vst [vmem:[%s728_s10 + $0x20] sm:$0xff] %v374_v33 }
 0x16c   : > { %v376_v34 = vpop.f32.mrf.mxu1 }
 0x16d   : > { %409 = vst [vmem:[%s728_s10 + $0x28] sm:$0xff] %v376_v34 }
 0x174   : > { %v379_v35 = vpop.f32.mrf.mxu1 }
 0x175   : > { %410 = vst [vmem:[%s728_s10 + $0x30] sm:$0xff] %v379_v35 }
 0x17c   : > { %v381_v36 = vpop.f32.mrf.mxu1 }
 0x17d   : > { %411 = vst [vmem:[%s728_s10 + $0x38] sm:$0xff] %v381_v36 }
 0x18a   : > { %v384_v37 = vpop.f32.mrf.mxu2 }
 0x18b   : > { %412 = vst [vmem:[%s728_s10 + $0x40] sm:$0xff] %v384_v37 }
 0x192   : > { %v386_v38 = vpop.f32.mrf.mxu2 }
 0x193   : > { %413 = vst [vmem:[%s728_s10 + $0x48] sm:$0xff] %v386_v38 }
 0x19a   : > { %v389_v39 = vpop.f32.mrf.mxu2 }
 0x19b   : > { %414 = vst [vmem:[%s728_s10 + $0x50] sm:$0xff] %v389_v39 }
 0x1a2   : > { %v391_v40 = vpop.f32.mrf.mxu2 }
 0x1a3   : > { %415 = vst [vmem:[%s728_s10 + $0x58] sm:$0xff] %v391_v40 }
 0x1aa   : > { %v394_v41 = vpop.f32.mrf.mxu3 }
 0x1ab   : > { %416 = vst [vmem:[%s728_s10 + $0x60] sm:$0xff] %v394_v41 }
 0x1b2   : > { %v396_v42 = vpop.f32.mrf.mxu3 }
 0x1b3   : > { %417 = vst [vmem:[%s728_s10 + $0x68] sm:$0xff] %v396_v42 }
 0x1ba   : > { %v399_v43 = vpop.f32.mrf.mxu3 }
 0x1bb   : > { %418 = vst [vmem:[%s728_s10 + $0x70] sm:$0xff] %v399_v43 }
 0x1c2   : > { %v401_v44 = vpop.f32.mrf.mxu3 }
 0x1c3   : > { %419 = vst [vmem:[%s728_s10 + $0x78] sm:$0xff] %v401_v44 }
 0x1c4 PF: > { %s15_s15 = sadd.s32 1, %s588_s15  }
 0x1c5   : > { %p12_p6 = scmp.ge.s32.totalorder %s15_s15, 4  }
 0x1c7   :  { %14 = sbr.rel (!%p12_p6) target bundleno = 1 (0x1), region = 74 }

// kernel: bottleneck_forward.7
= control target key start
LH: loop header
LB: loop body
LE: loop exit
PB: predicated region body
PF: predicated region fallthrough
CT: control target
= control target key end

     0   :  { %12 = vsyncpa [#allocation3], 0  ;;  %s994_s0 = inlined_call_operand.vmem [shape: bf16[128,128], index: 0, kind: input, shape index: {}]   ;;  %s995_s1 = inlined_call_operand.vmem [shape: f32[1,128], index: 1, kind: input, shape index: {}]   ;;  %s996_s2 = inlined_call_operand.vmem [shape: f32[1,128], index: 2, kind: input, shape index: {}]   ;;  %s997_s3 = inlined_call_operand.vmem [shape: bf16[128,128], index: 3, kind: input, shape index: {}]   ;;  %s998_s4 = inlined_call_operand.vmem [shape: f32[1,128], index: 4, kind: input, shape index: {}]   ;;  %s999_s5 = inlined_call_operand.vmem [shape: f32[1,128], index: 5, kind: input, shape index: {}]   ;;  %s1000_s6 = inlined_call_operand.vmem [shape: f32[128,128], index: 6, kind: input, shape index: {}]   ;;  %s1001_s7 = inlined_call_operand.hbm [shape: f32[128,128], index: 7, kind: output, shape index: {}]  }
   0x1   :  { %14 = vsyncpa [#allocation3 + $0x1], 0  ;;  %s842_s24 = smov 0   ;;  %s844_s25 = smov 0  }
   0x2   :  { %s846_s26 = smov 0   ;;  %s848_s27 = smov 0  }
   0x3 LB: > { %s863_s28 = sadd.s32 4294967295, %s798_s27   ;;  %s593_s29 = sadd.s32 4294967294, %s798_s27   ;;  %s798_s27 = sphi %s848_s27, %s1007_s27   ;;  %s794_s26 = sphi %s846_s26, %s1006_s26   ;;  %s790_s25 = sphi %s844_s25, %s1005_s25   ;;  %s786_s24 = sphi %s842_s24, %s1004_s24  }
   0x4   : > { %s867_s30 = sadd.s32 1, %s798_s27   ;;  %s184_s8 = sadd.s32 1, %s794_s26 }
   0x5   : > { %s181_s9 = ssub.s32 %s798_s27, %s867_s30  ;;  %p194_p0 = scmp.ne.s32.totalorder %s794_s26, %s790_s25 }
   0x6   : > { %p182_p1 = scmp.eq.s32.totalorder %s181_s9, 0  ;;  %p195_p2 = scmp.eq.s32.totalorder %s863_s28, 1 }
   0x7   : > { %p200_p3 = scmp.ne.s32.totalorder %s790_s25, %s786_s24  ;;  %p201_p4 = scmp.eq.s32.totalorder %s593_s29, 1 }
   0x8   : > { %s878_s10 = scalar_select %p182_p1, %s794_s26, %s184_s8  }
   0x9   : > { %p880_p5 = por %p195_p2, %p194_p0  ;;  %p884_p6 = por %p201_p4, %p200_p3 }
   0xa   : > { %p596_p7 = scmp.ge.s32.totalorder %s798_s27, 1  ;;  %p252_p8 = scmp.lt.s32.totalorder %s798_s27, 3 }
   0xc   : > { %p253_p9 = pnand %p596_p7, %p252_p8 }
   0xd   : > { %s598_s15 = sshll.u32 (!%p253_p9), %s863_s28, 3  ;;  %s286_s20 = sand.u32 (!%p253_p9), 1, %s790_s25  }
   0xe   : > { %256 = sbr.rel (%p253_p9) target bundleno = 205 (0xcd), region = 48  ;;  %p290_p10 = scmp.lt.s32.totalorder (!%p253_p9), %s598_s15, 15 }
   0xf   : > { %s647_s22 = sshll.u32 (!%p253_p9), %s863_s28, 6  ;;  %s504_s13 = scalar_lea.sflag (!%p253_p9), [#allocation3], %s286_s20 }
  0x10   : > { %s756_s19 = scalar_lea.hbm (!%p253_p9), %s1001_s7, 128 }
  0x13   : > { %v646_v0 = vld [vmem:[%s997_s3 + $0x38] sm:$0xff]  ;;  %v645_v1 = vld [vmem:[%s997_s3 + $0x30] sm:$0xff]  ;;  %s1009_s15 = smov (!%p290_p10, %s598_s15), 15  ;;  %v644_v2 = vld [vmem:[%s997_s3 + $0x28] sm:$0xff] }
  0x14   : > { %418 = vmatpush.bf16.msra.mxu0 %v646_v0  ;;  %667 = vmatpush.bf16.msra.mxu1 %v646_v0  ;;  %s599_s18 = sshll.u32 %s1009_s15, 2  ;;  %v643_v4 = vld [vmem:[%s997_s3 + $0x20] sm:$0xff]  ;;  %v642_v14 = vld [vmem:[%s997_s3 + $0x18] sm:$0xff]  ;;  %v641_v24 = vld [vmem:[%s997_s3 + $0x10] sm:$0xff]  ;;  %s601_s8 = sshll.u32 %s1009_s15, 3 }
  0x15   : > { %668 = vmatpush.bf16.msra.mxu2 %v646_v0  ;;  %669 = vmatpush.bf16.msra.mxu3 %v646_v0  ;;  %s293_s23 = scalar_lea.vmem %s994_s0, %s599_s18  ;;  %v732_v9 = vld [vmem:[%s995_s1] ss:$0 sm:$0xff]  ;;  %v640_v33 = vld [vmem:[%s997_s3 + $0x8] sm:$0xff]  ;;  %s934_s17 = scalar_lea.vmem %s1000_s6, %s601_s8 }
  0x16   : > { %v649_v3 = vld [vmem:[%s293_s23] sm:$0xff]   ;;  %v664_v5 = vld [vmem:[%s293_s23 + $0x8] sm:$0xff]   ;;  %v665_v6 = vld [vmem:[%s293_s23 + $0x10] sm:$0xff]   ;;  %s597_s15 = sshll.u32 %s286_s20, 6  ;;  %s515_s8 = scalar_lea.hbm %s1001_s7, %s647_s22 }
  0x17   : > { %v666_v7 = vld [vmem:[%s293_s23 + $0x18] sm:$0xff]   ;;  %v650_v8 = vunpack.c.l.bf16 %v649_v3  ;;  %v651_v10 = vunpack.c.h.bf16 %v649_v3  ;;  %v654_v11 = vunpack.c.l.bf16 %v664_v5  ;;  %v655_v12 = vunpack.c.h.bf16 %v664_v5  ;;  %v733_v19 = vld [vmem:[%s996_s2] ss:$0 sm:$0xff]  ;;  %v473_v57 = vld [vmem:[%s934_s17 + $0x10] sm:$0xff]  ;;  %s944_s21 = scalar_lea.vmem [#allocation2], %s597_s15  ;;  %s518_s9 = sshll.u32 %s515_s8, 4  ;;  %s519_s9 = int_to_ptr.hbm [resolvable:$true] %s518_s9 }
  0x18   : > { %419 = vmatpush.bf16.msra.mxu0 %v645_v1  ;;  %670 = vmatpush.bf16.msra.mxu1 %v645_v1  ;;  %v658_v13 = vunpack.c.l.bf16 %v665_v6  ;;  %v659_v15 = vunpack.c.h.bf16 %v665_v6  ;;  %v662_v16 = vunpack.c.l.bf16 %v666_v7  ;;  %v663_v17 = vunpack.c.h.bf16 %v666_v7  ;;  %v639_v41 = vld [vmem:[%s997_s3] sm:$0xff]  ;;  %v477_v7 = vld [vmem:[%s934_s17 + $0x30] sm:$0xff]  ;;  %s516_s28 = sshll.u32 %s944_s21, 4  ;;  %s750_s14 = sshra.s32 %s519_s9, 4  ;;  %s517_s28 = int_to_ptr.vmem [resolvable:$true] %s516_s28  ;;  %s751_s14 = int_to_ptr.hbm [resolvable:$true] %s750_s14 }
  0x19   : > { %671 = vmatpush.bf16.msra.mxu2 %v645_v1  ;;  %672 = vmatpush.bf16.msra.mxu3 %v645_v1  ;;  %v322_v18 = vmul.f32 %v732_v9, %v650_v8  ;;  %v323_v20 = vmul.f32 %v732_v9, %v651_v10  ;;  %v324_v21 = vmul.f32 %v732_v9, %v654_v11  ;;  %v734_v50 = vld [vmem:[%s998_s4] ss:$0 sm:$0xff]  ;;  %s752_s16 = scalar_lea.hbm %s751_s14, 64  ;;  %p757_p0 = scmp.lt.s32.totalorder %s751_s14, %s1001_s7 }
  0x1a   : > { %v325_v22 = vmul.f32 %v732_v9, %v655_v12  ;;  %v326_v23 = vmul.f32 %v732_v9, %v658_v13  ;;  %v327_v25 = vmul.f32 %v732_v9, %v659_v15  ;;  %v328_v26 = vmul.f32 %v732_v9, %v662_v16  ;;  %v735_v51 = vld [vmem:[%s999_s5] ss:$0 sm:$0xff]  ;;  %v472_v12 = vld [vmem:[%s934_s17 + $0x8] sm:$0xff]  ;;  %v474_v13 = vld [vmem:[%s934_s17 + $0x18] sm:$0xff]  ;;  %p753_p11 = scmp.ne.s32.totalorder %s751_s14, %s752_s16  ;;  %p758_p1 = scmp.lt.s32.totalorder %s756_s19, %s752_s16 }
  0x1b   : > { %v329_v27 = vmul.f32 %v732_v9, %v663_v17  ;;  %v334_v28 = vadd.f32 %v733_v19, %v322_v18  ;;  %v335_v29 = vadd.f32 %v733_v19, %v323_v20  ;;  %v336_v30 = vadd.f32 %v733_v19, %v324_v21  ;;  %v471_v56 = vld [vmem:[%s934_s17] sm:$0xff] }
  0x1c   : > { %420 = vmatpush.bf16.msra.mxu0 %v644_v2  ;;  %673 = vmatpush.bf16.msra.mxu1 %v644_v2  ;;  %v337_v31 = vadd.f32 %v733_v19, %v325_v22  ;;  %v338_v32 = vadd.f32 %v733_v19, %v326_v23  ;;  %v339_v34 = vadd.f32 %v733_v19, %v327_v25  ;;  %v475_v6 = vld [vmem:[%s934_s17 + $0x20] sm:$0xff]  ;;  %p754_p12 = pnand %p753_p11, %p880_p5  ;;  %p759_p2 = por %p758_p1, %p757_p0 }
  0x1d   : > { %674 = vmatpush.bf16.msra.mxu2 %v644_v2  ;;  %675 = vmatpush.bf16.msra.mxu3 %v644_v2  ;;  %v340_v35 = vadd.f32 %v733_v19, %v328_v26  ;;  %v341_v36 = vadd.f32 %v733_v19, %v329_v27  ;;  %v342_v37 = vmax.f32 %v334_v28, 0.0  ;;  %v343_v38 = vmax.f32 %v335_v29, 0.0  ;;  %v476_v28 = vld [vmem:[%s934_s17 + $0x28] sm:$0xff]  ;;  %v478_v29 = vld [vmem:[%s934_s17 + $0x38] sm:$0xff] }
  0x1e   : > { %v344_v39 = vmax.f32 %v336_v30, 0.0  ;;  %v345_v40 = vmax.f32 %v337_v31, 0.0  ;;  %v346_v42 = vmax.f32 %v338_v32, 0.0  ;;  %v347_v43 = vmax.f32 %v339_v34, 0.0  ;;  %p755_p13 = pneg %p754_p12 }
  0x1f   : > { %v348_v44 = vmax.f32 %v340_v35, 0.0  ;;  %v349_v45 = vmax.f32 %v341_v36, 0.0  ;;  %v350_v46 = vpack.c.bf16 %v343_v38, %v342_v37 }
  0x20   : > { %421 = vmatpush.bf16.msra.mxu0 %v643_v4  ;;  %676 = vmatpush.bf16.msra.mxu1 %v643_v4  ;;  %v351_v47 = vpack.c.bf16 %v345_v40, %v344_v39  ;;  %v352_v48 = vpack.c.bf16 %v347_v43, %v346_v42  ;;  %p760_p3 = pnand %p759_p2, %p755_p13 }
  0x21   : > { %677 = vmatpush.bf16.msra.mxu2 %v643_v4  ;;  %678 = vmatpush.bf16.msra.mxu3 %v643_v4  ;;  %v353_v49 = vpack.c.bf16 %v349_v45, %v348_v44 }
  0x24   : > { %422 = vmatpush.bf16.msra.mxu0 %v642_v14  ;;  %679 = vmatpush.bf16.msra.mxu1 %v642_v14 }
  0x25   : > { %680 = vmatpush.bf16.msra.mxu2 %v642_v14  ;;  %681 = vmatpush.bf16.msra.mxu3 %v642_v14 }
  0x28   : > { %423 = vmatpush.bf16.msra.mxu0 %v641_v24  ;;  %682 = vmatpush.bf16.msra.mxu1 %v641_v24 }
  0x29   : > { %683 = vmatpush.bf16.msra.mxu2 %v641_v24  ;;  %684 = vmatpush.bf16.msra.mxu3 %v641_v24 }
  0x2c   : > { %424 = vmatpush.bf16.msra.mxu0 %v640_v33  ;;  %685 = vmatpush.bf16.msra.mxu1 %v640_v33 }
  0x2d   : > { %686 = vmatpush.bf16.msra.mxu2 %v640_v33  ;;  %687 = vmatpush.bf16.msra.mxu3 %v640_v33 }
  0x30   : > { %425 = vmatpush.bf16.msra.mxu0 %v639_v41  ;;  %688 = vmatpush.bf16.msra.mxu1 %v639_v41 }
  0x31   : > { %689 = vmatpush.bf16.msra.mxu2 %v639_v41  ;;  %690 = vmatpush.bf16.msra.mxu3 %v639_v41 }
  0x33   : > { %426 = vmatmul.bf16.vlgmr.msra.gmra.mxu0 %v350_v46  ;;  %431 = vmatmul.bf16.vlgmr.msra.gmra.mxu1 %v351_v47 }
  0x34   : > { %436 = vmatmul.bf16.vlgmr.msra.gmra.mxu2 %v352_v48  ;;  %441 = vmatmul.bf16.vlgmr.msra.gmra.mxu3 %v353_v49 }
  0xb0   : > { %v427_v52 = vpop.f32.mrf.mxu0  ;;  %v432_v53 = vpop.f32.mrf.mxu1 }
  0xb1   : > { %v451_v54 = vmul.f32 %v734_v50, %v427_v52  ;;  %v453_v55 = vmul.f32 %v734_v50, %v432_v53 }
  0xb3   : > { %v463_v58 = vadd.f32 %v735_v51, %v451_v54  ;;  %v465_v59 = vadd.f32 %v735_v51, %v453_v55 }
  0xb5   : > { %v479_v60 = vadd.f32 %v471_v56, %v463_v58  ;;  %v481_v61 = vadd.f32 %v473_v57, %v465_v59 }
  0xb7   : > { %v487_v62 = vmax.f32 %v479_v60, 0.0  ;;  %v489_v63 = vmax.f32 %v481_v61, 0.0  ;;  %v437_v0 = vpop.f32.mrf.mxu2  ;;  %v442_v1 = vpop.f32.mrf.mxu3 }
  0xb8   : > { %v455_v2 = vmul.f32 %v734_v50, %v437_v0  ;;  %v457_v3 = vmul.f32 %v734_v50, %v442_v1  ;;  %v429_v4 = vpop.f32.mrf.mxu0  ;;  %v434_v5 = vpop.f32.mrf.mxu1 }
  0xb9   : > { %495 = vst [vmem:[%s944_s21] sm:$0xff] %v487_v62  ;;  %v452_v8 = vmul.f32 %v734_v50, %v429_v4  ;;  %v454_v9 = vmul.f32 %v734_v50, %v434_v5 }
  0xba   : > { %497 = vst [vmem:[%s944_s21 + $0x10] sm:$0xff] %v489_v63  ;;  %v467_v10 = vadd.f32 %v735_v51, %v455_v2  ;;  %v469_v11 = vadd.f32 %v735_v51, %v457_v3 }
  0xbb   : > { %v464_v14 = vadd.f32 %v735_v51, %v452_v8  ;;  %v466_v15 = vadd.f32 %v735_v51, %v454_v9 }
  0xbc   : > { %v483_v16 = vadd.f32 %v475_v6, %v467_v10  ;;  %v485_v17 = vadd.f32 %v477_v7, %v469_v11 }
  0xbd   : > { %v480_v18 = vadd.f32 %v472_v12, %v464_v14  ;;  %v482_v19 = vadd.f32 %v474_v13, %v466_v15 }
  0xbe   : > { %v491_v20 = vmax.f32 %v483_v16, 0.0  ;;  %v493_v21 = vmax.f32 %v485_v17, 0.0 }
  0xbf   : > { %v488_v22 = vmax.f32 %v480_v18, 0.0  ;;  %v490_v23 = vmax.f32 %v482_v19, 0.0  ;;  %v439_v24 = vpop.f32.mrf.mxu2  ;;  %v444_v25 = vpop.f32.mrf.mxu3 }
  0xc0   : > { %499 = vst [vmem:[%s944_s21 + $0x20] sm:$0xff] %v491_v20  ;;  %v456_v26 = vmul.f32 %v734_v50, %v439_v24  ;;  %v458_v27 = vmul.f32 %v734_v50, %v444_v25 }
  0xc1   : > { %501 = vst [vmem:[%s944_s21 + $0x30] sm:$0xff] %v493_v21 }
  0xc2   : > { %496 = vst [vmem:[%s944_s21 + $0x8] sm:$0xff] %v488_v22  ;;  %v468_v30 = vadd.f32 %v735_v51, %v456_v26  ;;  %v470_v31 = vadd.f32 %v735_v51, %v458_v27 }
  0xc3   : > { %498 = vst [vmem:[%s944_s21 + $0x18] sm:$0xff] %v490_v23 }
  0xc4   : > { %v484_v32 = vadd.f32 %v476_v28, %v468_v30  ;;  %v486_v33 = vadd.f32 %v478_v29, %v470_v31 }
  0xc6   : > { %v492_v34 = vmax.f32 %v484_v32, 0.0  ;;  %v494_v35 = vmax.f32 %v486_v33, 0.0 }
  0xc8   : > { %500 = vst [vmem:[%s944_s21 + $0x28] sm:$0xff] %v492_v34 }
  0xc9   : > { %502 = vst [vmem:[%s944_s21 + $0x38] sm:$0xff] %v494_v35 }
  0xca   : > { %763 = shalt.err (!%p760_p3)
}
  0xcb   : > { %s800_s20 = smov 128   ;;  %s801_s21 = smov 8  }
  0xcc   : > { %691 = dma.vmem_to_hbm [thread:$0]  (%p880_p5), %s517_s28, 1024, %s519_s9, %s504_s13, %s800_s20, %s800_s20, %s801_s21  }
  0xcd PF: > { %p697_p4 = scmp.ge.s32.totalorder %s798_s27, 2  ;;  %s533_s23 = sand.u32 1, %s786_s24  }
  0xce   : > { %s534_s29 = scalar_lea.sflag [#allocation3], %s533_s23 }
  0xcf   : > { %p694_p7 = pnand %p697_p4, %p884_p6 }
  0xd1   : > { %p695_p8 = pneg %p694_p7 }
  0xd3   : > { %781 = dma.done.wait (%p695_p8), %s534_s29, 1024  }
  0xd4   : > { %783 = vsyncadd (%p695_p8), %s534_s29, 4294966272  ;;  %p17_p9 = scmp.ge.s32.totalorder %s867_s30, 4   ;;  %s1004_s24 = smov %s790_s25 }
  0xd5   : > { %s1005_s25 = smov %s794_s26  ;;  %s1006_s26 = smov %s878_s10 }
  0xd6   : > { %s1007_s27 = smov %s867_s30  ;;  %19 = sbr.rel (!%p17_p9) target bundleno = 3 (0x3), region = 86 }
  0xdb   :  { %540 = vsyncpa [#allocation3], 1 }
  0xdc   :  { %542 = vsyncpa [#allocation3 + $0x1], 1 }

// kernel: bottleneck_forward.5
= control target key start
LH: loop header
LB: loop body
LE: loop exit
PB: predicated region body
PF: predicated region fallthrough
CT: control target
= control target key end

     0   :  { %s2146_s18 = smov 0   ;;  %s2728_s0 = inlined_call_operand.vmem [shape: bf16[128,128], index: 0, kind: input, shape index: {}]   ;;  %s2729_s1 = inlined_call_operand.vmem [shape: f32[1,128], index: 1, kind: input, shape index: {}]   ;;  %s2730_s2 = inlined_call_operand.vmem [shape: f32[1,128], index: 2, kind: input, shape index: {}]   ;;  %s2731_s3 = inlined_call_operand.vmem [shape: bf16[9,128,128], index: 3, kind: input, shape index: {}]   ;;  %s2732_s4 = inlined_call_operand.vmem [shape: bf16[128,128], index: 4, kind: output, shape index: {0}]   ;;  %s2733_s5 = inlined_call_operand.vmem [shape: f32[16,128], index: 5, kind: output, shape index: {1}]  }
   0x1 LB: > { %s2152_s19 = sadd.s32 4294967295, %s2112_s18   ;;  %p1504_p0 = scmp.ge.s32.totalorder %s2112_s18, 1  ;;  %s2112_s18 = sphi %s2146_s18, %s16_s18  }
   0x2   : > { %p191_p1 = scmp.lt.s32.totalorder %s2112_s18, 3 }
   0x4   : > { %p192_p2 = pnand %p1504_p0, %p191_p1 }
   0x5   : > { %s1505_s22 = sshll.u32 (!%p192_p2), %s2152_s19, 3  ;;  %s1510_s25 = sshll.u32 (!%p192_p2), %s2152_s19, 6 }
   0x6   : > { %195 = sbr.rel (%p192_p2) target bundleno = 346 (0x15a), region = 36  ;;  %p224_p3 = scmp.lt.s32.totalorder (!%p192_p2), %s1505_s22, 15 }
   0x7   : > { %p235_p4 = scmp.lt.s32.totalorder (!%p192_p2), %s2152_s19, 1 }
   0xb   : > { %v1944_v0 = vld [vmem:[%s2731_s3 + $0x78] sm:$0xff]  ;;  %v288_v1 = vlaneseq  ;;  %v2114_v3 = vmov 0.0   ;;  %v1943_v4 = vld [vmem:[%s2731_s3 + $0x70] sm:$0xff]  ;;  %s2741_s22 = smov (!%p224_p3, %s1505_s22), 15  ;;  %v2181_v9 = vstv %s1510_s25  ;;  %v1942_v12 = vld [vmem:[%s2731_s3 + $0x68] sm:$0xff]  ;;  %vm2115_vm8 = vmmov 1  }
   0xc   : > { %v1952_v2 = vld [vmem:[%s2731_s3 + $0xb8] sm:$0xff]  ;;  %330 = vst [vmem:[#allocation2 + $0x40] sm:$0xff] %v2114_v3  ;;  %2043 = vmatpush.bf16.msra.mxu1 %v1944_v0  ;;  %456 = vmatpush.bf16.msra.mxu0 %v1944_v0  ;;  %v1951_v6 = vld [vmem:[%s2731_s3 + $0xb0] sm:$0xff]  ;;  %s1506_s9 = sshll.u32 %s2741_s22, 2  ;;  %v2203_v13 = vld [vmem:[%s2729_s1] ss:$0 sm:$0xff] }
   0xd   : > { %v2168_v5 = vshrl.u32 %v288_v1, 7  ;;  %331 = vst [vmem:[#allocation2 + $0x48] sm:$0x3] %v2114_v3  ;;  %639 = vmatpush.bf16.msra.mxu2 %v1952_v2  ;;  %v1960_v7 = vld [vmem:[%s2731_s3 + $0xf8] sm:$0xff]  ;;  %v1959_v10 = vld [vmem:[%s2731_s3 + $0xf0] sm:$0xff]  ;;  %s2198_s14 = scalar_lea.vmem %s2728_s0, %s1506_s9  ;;  %v1950_v14 = vld [vmem:[%s2731_s3 + $0xa8] sm:$0xff]  ;;  %s2703_s28 = scalar_lea.vmem %s2732_s4, %s1506_s9 }
   0xe   : > { %332 = vst [vmem:[#allocation2 + $0x50] sm:$0xff] %v2114_v3  ;;  %753 = vmatpush.bf16.msra.mxu3 %v1960_v7  ;;  %v2037_v15 = vld [vmem:[%s2198_s14 + $0x8] sm:$0xff]   ;;  %v2038_v16 = vld [vmem:[%s2198_s14 + $0x10] sm:$0xff]   ;;  %v2217_v20 = vld [vmem:[%s2730_s2] ss:$0 sm:$0xff]  ;;  %s2743_s19 = smov (!%p235_p4, %s2152_s19), 1 }
   0xf   : > { %v292_v8 = vadd.s32 24, %v2168_v5  ;;  %322 = vst [vmem:[#allocation2] sm:$0xff] %v2114_v3  ;;  %v293_v11 = vadd.s32 32, %v2168_v5  ;;  %v2008_v18 = vunpack.c.h.bf16 %v2037_v15  ;;  %v2011_v19 = vunpack.c.l.bf16 %v2038_v16  ;;  %v1958_v21 = vld [vmem:[%s2731_s3 + $0xe8] sm:$0xff]  ;;  %v2002_v23 = vld [vmem:[%s2198_s14] sm:$0xff]   ;;  %v2249_v37 = vld [vmem:[%s2198_s14 + $0x18] sm:$0xff]  }
  0x10   : > { %324 = vst [vmem:[#allocation2 + $0x10] sm:$0xff] %v2114_v3  ;;  %2044 = vmatpush.bf16.msra.mxu1 %v1943_v4  ;;  %457 = vmatpush.bf16.msra.mxu0 %v1943_v4  ;;  %v2012_v24 = vunpack.c.h.bf16 %v2038_v16  ;;  %v2007_v25 = vunpack.c.l.bf16 %v2037_v15  ;;  %v1941_v26 = vld [vmem:[%s2731_s3 + $0x60] sm:$0xff]  ;;  %v2003_v29 = vunpack.c.l.bf16 %v2002_v23  ;;  %v2241_v31 = vadd.s32 %v2181_v9, %v2168_v5  ;;  %v1940_v43 = vld [vmem:[%s2731_s3 + $0x58] sm:$0xff]  ;;  %v1939_v60 = vld [vmem:[%s2731_s3 + $0x50] sm:$0xff]  ;;  %s1509_s22 = sshll.u32 %s2743_s19, 3 }
  0x11   : > { %640 = vmatpush.bf16.msra.mxu2 %v1951_v6  ;;  %v2211_v17 = vadd.s32 %v2181_v9, %v292_v8  ;;  %333 = vst [vmem:[#allocation2 + $0x58] sm:$0x3] %v2114_v3  ;;  %v2224_v22 = vadd.s32 %v2181_v9, %v293_v11  ;;  %v262_v27 = vmul.f32 %v2203_v13, %v2008_v18  ;;  %v1949_v30 = vld [vmem:[%s2731_s3 + $0xa0] sm:$0xff]  ;;  %v294_v32 = vadd.s32 40, %v2168_v5  ;;  %v1948_v48 = vld [vmem:[%s2731_s3 + $0x98] sm:$0xff]  ;;  %v1947_v0 = vld [vmem:[%s2731_s3 + $0x90] sm:$0xff]  ;;  %s238_s30 = scalar_lea.vmem %s2733_s5, %s1509_s22 }
  0x12   : > { %323 = vst [vmem:[#allocation2 + $0x8] sm:$0x3] %v2114_v3  ;;  %754 = vmatpush.bf16.msra.mxu3 %v1959_v10  ;;  %v263_v28 = vmul.f32 %v2203_v13, %v2011_v19  ;;  %v2004_v33 = vunpack.c.h.bf16 %v2002_v23  ;;  %v259_v36 = vmul.f32 %v2203_v13, %v2003_v29  ;;  %v264_v38 = vmul.f32 %v2203_v13, %v2012_v24  ;;  %v1957_v39 = vld [vmem:[%s2731_s3 + $0xe0] sm:$0xff]  ;;  %v1956_v57 = vld [vmem:[%s2731_s3 + $0xd8] sm:$0xff]  ;;  %v1955_v1 = vld [vmem:[%s2731_s3 + $0xd0] sm:$0xff] }
  0x13   : > { %325 = vst [vmem:[#allocation2 + $0x18] sm:$0x3] %v2114_v3  ;;  %vm309_vm0 = vcmp.lt.s32.totalorder %v2211_v17, 128  ;;  %v274_v34 = vadd.f32 %v2217_v20, %v262_v27  ;;  %vm310_vm1 = vcmp.lt.s32.totalorder %v2224_v22, 128  ;;  %v2015_v40 = vunpack.c.l.bf16 %v2249_v37  ;;  %v1938_v11 = vld [vmem:[%s2731_s3 + $0x48] sm:$0xff]  ;;  %v1936_v24 = vld [vmem:[%s2731_s3 + $0x38] sm:$0xff] }
  0x14   : > { %2045 = vmatpush.bf16.msra.mxu1 %v1942_v12  ;;  %458 = vmatpush.bf16.msra.mxu0 %v1942_v12  ;;  %326 = vst [vmem:[#allocation2 + $0x20] sm:$0xff] %v2114_v3  ;;  %v275_v35 = vadd.f32 %v2217_v20, %v263_v28  ;;  %v260_v41 = vmul.f32 %v2203_v13, %v2004_v33  ;;  %v295_v47 = vadd.s32 48, %v2168_v5  ;;  %v290_v54 = vadd.s32 8, %v2168_v5  ;;  %v1946_v12 = vld [vmem:[%s2731_s3 + $0x88] sm:$0xff]  ;;  %v1984_v27 = vld [vmem:[%s2731_s3 + $0x1b8] sm:$0xff]  ;;  %v1953_v29 = vld [vmem:[%s2731_s3 + $0xc0] sm:$0xff] }
  0x15   : > { %641 = vmatpush.bf16.msra.mxu2 %v1950_v14  ;;  %327 = vst [vmem:[#allocation2 + $0x28] sm:$0x3] %v2114_v3  ;;  %v261_v42 = vmul.f32 %v2203_v13, %v2007_v25  ;;  %v2263_v44 = vmax.f32 %v274_v34, 0.0  ;;  %v271_v46 = vadd.f32 %v2217_v20, %v259_v36  ;;  %v265_v49 = vmul.f32 %v2203_v13, %v2015_v40  ;;  %v1954_v16 = vld [vmem:[%s2731_s3 + $0xc8] sm:$0xff]  ;;  %v1945_v25 = vld [vmem:[%s2731_s3 + $0x80] sm:$0xff]  ;;  %v1992_v33 = vld [vmem:[%s2731_s3 + $0x1f8] sm:$0xff] }
  0x16   : > { %328 = vst [vmem:[#allocation2 + $0x30] sm:$0xff] %v2114_v3  ;;  %755 = vmatpush.bf16.msra.mxu3 %v1958_v21  ;;  %v2265_v45 = vmax.f32 %v275_v35, 0.0  ;;  %v2276_v50 = vadd.s32 %v2181_v9, %v294_v32  ;;  %v276_v52 = vadd.f32 %v2217_v20, %v264_v38  ;;  %v272_v53 = vadd.f32 %v2217_v20, %v260_v41  ;;  %v1937_v21 = vld [vmem:[%s2731_s3 + $0x40] sm:$0xff]  ;;  %v1967_v35 = vld [vmem:[%s2731_s3 + $0x130] sm:$0xff]  ;;  %vm2395_vm7 = vmpackc.low %vm310_vm1, %vm309_vm0 }
  0x17   : > { %329 = vst [vmem:[#allocation2 + $0x38] sm:$0x3] %v2114_v3  ;;  %v317_v51 = vsel %vm309_vm0, %v2263_v44, 0.0  ;;  %v2288_v56 = vmax.f32 %v271_v46, 0.0  ;;  %v277_v58 = vadd.f32 %v2217_v20, %v265_v49  ;;  %v273_v59 = vadd.f32 %v2217_v20, %v261_v42  ;;  %v1983_v38 = vld [vmem:[%s2731_s3 + $0x1b0] sm:$0xff]  ;;  %v1982_v49 = vld [vmem:[%s2731_s3 + $0x1a8] sm:$0xff] }
  0x18   : > { %2046 = vmatpush.bf16.msra.mxu1 %v1941_v26  ;;  %459 = vmatpush.bf16.msra.mxu0 %v1941_v26  ;;  %334 = vst [vmem:[#allocation2 + $0x60] sm:$0xff] %v2114_v3  ;;  %v318_v55 = vsel %vm310_vm1, %v2265_v45, 0.0  ;;  %vm306_vm2 = vcmp.lt.s32.totalorder %v2241_v31, 128  ;;  %v2300_v61 = vadd.s32 %v2181_v9, %v295_v47  ;;  %v291_v62 = vadd.s32 16, %v2168_v5  ;;  %v1968_v26 = vld [vmem:[%s2731_s3 + $0x138] sm:$0xff]  ;;  %v1991_v47 = vld [vmem:[%s2731_s3 + $0x1f0] sm:$0xff] }
  0x19   : > { %642 = vmatpush.bf16.msra.mxu2 %v1949_v30  ;;  %335 = vst [vmem:[#allocation2 + $0x68] sm:$0x3] %v2114_v3  ;;  %v2304_v63 = vadd.s32 %v2181_v9, %v290_v54  ;;  %v2314_v2 = vmax.f32 %v276_v52, 0.0  ;;  %vm311_vm3 = vcmp.lt.s32.totalorder %v2276_v50, 128  ;;  %v2317_v4 = vmax.f32 %v272_v53, 0.0  ;;  %v379_v23 = vld [vmem:[#allocation2 + $0x1] sm:$0xff]  ;;  %vm2073_vm9 = vmpackc.low %vm306_vm2, %vm2115_vm8 }
  0x1a   : > { %336 = vst [vmem:[#allocation2 + $0x70] sm:$0xff] %v2114_v3  ;;  %756 = vmatpush.bf16.msra.mxu3 %v1957_v39  ;;  %v2320_v6 = vadd.s32 %v2181_v9, %v291_v62  ;;  %v314_v7 = vsel %vm306_vm2, %v2288_v56, 0.0  ;;  %v2326_v8 = vmax.f32 %v277_v58, 0.0  ;;  %v2328_v10 = vmax.f32 %v273_v59, 0.0  ;;  %v562_v28 = vld [vmem:[#allocation2 + $0x2] sm:$0xff]  ;;  %v1935_v30 = vld [vmem:[%s2731_s3 + $0x30] sm:$0xff]  ;;  %vm2088_vm15 = vmpackc.low %vm311_vm3, %vm310_vm1 }
  0x1b   : > { %346 = vst [vmem:[#allocation2 + $0x41] sm:$0xff] %v317_v51  ;;  %vm307_vm4 = vcmp.lt.s32.totalorder %v2304_v63, 128  ;;  %vm312_vm5 = vcmp.lt.s32.totalorder %v2300_v61, 128  ;;  %v319_v14 = vsel %vm311_vm3, %v2314_v2, 0.0  ;;  %v2401_v40 = vpack.c.bf16 %v2265_v45, %v2263_v44  ;;  %v1933_v51 = vld [vmem:[%s2731_s3 + $0x20] sm:$0xff]  ;;  %v1990_v52 = vld [vmem:[%s2731_s3 + $0x1e8] sm:$0xff] }
  0x1c   : > { %2047 = vmatpush.bf16.msra.mxu1 %v1940_v43  ;;  %460 = vmatpush.bf16.msra.mxu0 %v1940_v43  ;;  %347 = vst [vmem:[#allocation2 + $0x51] sm:$0xff] %v318_v55  ;;  %vm308_vm6 = vcmp.lt.s32.totalorder %v2320_v6, 128  ;;  %v315_v15 = vsel %vm307_vm4, %v2317_v4, 0.0  ;;  %v320_v18 = vsel %vm312_vm5, %v2326_v8, 0.0  ;;  %v2074_v41 = vpack.c.bf16 %v2288_v56, %v379_v23  ;;  %v1934_v43 = vld [vmem:[%s2731_s3 + $0x28] sm:$0xff]  ;;  %v1965_v53 = vld [vmem:[%s2731_s3 + $0x120] sm:$0xff]  ;;  %vm2466_vm10 = vmpackc.low %vm312_vm5, %vm311_vm3 }
  0x1d   : > { %643 = vmatpush.bf16.msra.mxu2 %v1948_v48  ;;  %337 = vst [vmem:[#allocation2 + $0x78] sm:$0x3] %v2114_v3  ;;  %v316_v19 = vsel %vm308_vm6, %v2328_v10, 0.0  ;;  %v1966_v48 = vld [vmem:[%s2731_s3 + $0x128] sm:$0xff]  ;;  %v1981_v54 = vld [vmem:[%s2731_s3 + $0x1a0] sm:$0xff]  ;;  %v1932_v55 = vld [vmem:[%s2731_s3 + $0x18] sm:$0xff] }
  0x1e   : > { %338 = vst [vmem:[#allocation2 + $0x80] sm:$0xff] %v2114_v3  ;;  %757 = vmatpush.bf16.msra.mxu3 %v1956_v57  ;;  %v1964_v59 = vld [vmem:[%s2731_s3 + $0x118] sm:$0xff]  ;;  %vm2481_vm11 = vmpackc.low %vm308_vm6, %vm307_vm4  ;;  %v1962_v23 = vld [vmem:[%s2731_s3 + $0x108] sm:$0xff] }
  0x1f   : > { %339 = vst [vmem:[#allocation2 + $0x88] sm:$0x3] %v2114_v3  ;;  %vm2082_vm13 = vmpackc.low %vm307_vm4, %vm306_vm2  ;;  %v1987_v31 = vld [vmem:[%s2731_s3 + $0x1d0] sm:$0xff]  ;;  %v1973_v63 = vld [vmem:[%s2731_s3 + $0x160] sm:$0xff] }
  0x20   : > { %2048 = vmatpush.bf16.msra.mxu1 %v1939_v60  ;;  %461 = vmatpush.bf16.msra.mxu0 %v1939_v60  ;;  %340 = vst [vmem:[#allocation2 + $0x90] sm:$0xff] %v2114_v3  ;;  %vm2085_vm14 = vmpackc.low %vm309_vm0, %vm308_vm6  ;;  %v1985_v6 = vld [vmem:[%s2731_s3 + $0x1c0] sm:$0xff] }
  0x21   : > { %644 = vmatpush.bf16.msra.mxu2 %v1947_v0  ;;  %341 = vst [vmem:[#allocation2 + $0x98] sm:$0x3] %v2114_v3 }
  0x22   : > { %343 = vst [vmem:[#allocation2 + $0x11] sm:$0xff] %v314_v7  ;;  %758 = vmatpush.bf16.msra.mxu3 %v1955_v1  ;;  %v2454_v0 = vld [vmem:[#allocation2 + $0x40] sm:$0xff]  ;;  %v1931_v1 = vld [vmem:[%s2731_s3 + $0x10] sm:$0xff] }
  0x23   : > { %348 = vst [vmem:[#allocation2 + $0x61] sm:$0xff] %v319_v14  ;;  %v1963_v7 = vld [vmem:[%s2731_s3 + $0x110] sm:$0xff] }
  0x24   : > { %2049 = vmatpush.bf16.msra.mxu1 %v1938_v11  ;;  %462 = vmatpush.bf16.msra.mxu0 %v1938_v11  ;;  %349 = vst [vmem:[#allocation2 + $0x71] sm:$0xff] %v320_v18  ;;  %v1980_v18 = vld [vmem:[%s2731_s3 + $0x198] sm:$0xff] }
  0x25   : > { %645 = vmatpush.bf16.msra.mxu2 %v1946_v12  ;;  %344 = vst [vmem:[#allocation2 + $0x21] sm:$0xff] %v315_v15  ;;  %v2472_v12 = vpack.c.bf16 %v2326_v8, %v2314_v2  ;;  %v2487_v15 = vpack.c.bf16 %v2328_v10, %v2317_v4 }
  0x26   : > { %345 = vst [vmem:[#allocation2 + $0x31] sm:$0xff] %v316_v19  ;;  %759 = vmatpush.bf16.msra.mxu3 %v1954_v16  ;;  %v1989_v19 = vld [vmem:[%s2731_s3 + $0x1e0] sm:$0xff] }
  0x28   : > { %2050 = vmatpush.bf16.msra.mxu1 %v1937_v21  ;;  %463 = vmatpush.bf16.msra.mxu0 %v1937_v21  ;;  %v1930_v21 = vld [vmem:[%s2731_s3 + $0x8] sm:$0xff]  ;;  %v1140_v61 = vld [vmem:[#allocation2 + $0x91] sm:$0xff] }
  0x29   : > { %646 = vmatpush.bf16.msra.mxu2 %v1945_v25  ;;  %v2377_v32 = vld [vmem:[#allocation2 + $0x12] sm:$0xff] }
  0x2a   : > { %v570_v34 = vpack.c.bf16 %v2377_v32, %v562_v28  ;;  %v2386_v36 = vld [vmem:[#allocation2 + $0x10] sm:$0xff]  ;;  %760 = vmatpush.bf16.msra.mxu3 %v1953_v29  ;;  %v1988_v25 = vld [vmem:[%s2731_s3 + $0x1d8] sm:$0xff]  ;;  %v1929_v28 = vld [vmem:[%s2731_s3] sm:$0xff]  ;;  %v296_v29 = vadd.s32 56, %v2168_v5 }
  0x2b   : > { %2072 = vmatmul.msk.bf16.vlgmr.msra.gmra.mxu1 %vm2395_vm7, %v2401_v40  ;;  %2075 = vmatmul.msk.bf16.vlgmr.msra.gmra.mxu0 %vm2073_vm9, %v2074_v41  ;;  %v359_v41 = vpack.c.bf16 %v2386_v36, %v2114_v3  ;;  %v1978_v3 = vld [vmem:[%s2731_s3 + $0x188] sm:$0xff]  ;;  %v1254_v39 = vld [vmem:[#allocation2 + $0x92] sm:$0xff] }
  0x2c   : > { %533 = vmatpush.bf16.msrb.mxu1 %v1936_v24  ;;  %867 = vmatpush.bf16.msrb.mxu0 %v1968_v26  ;;  %v2410_v42 = vld [vmem:[#allocation2 + $0x20] sm:$0xff]  ;;  %v1979_v24 = vld [vmem:[%s2731_s3 + $0x190] sm:$0xff]  ;;  %v2016_v26 = vunpack.c.h.bf16 %v2249_v37 }
  0x2d   : > { %1096 = vmatpush.bf16.msrb.mxu2 %v1984_v27  ;;  %v684_v46 = vpack.c.bf16 %v2410_v42, %v2386_v36  ;;  %v2441_v57 = vld [vmem:[#allocation2 + $0x22] sm:$0xff]  ;;  %v2443_v58 = vld [vmem:[#allocation2 + $0x32] sm:$0xff]  ;;  %v2083_v36 = vpack.c.bf16 %v2317_v4, %v2288_v56 }
  0x2e   : > { %647 = vmatmul.bf16.vlgmr.msra.gmra.mxu2 %v570_v34  ;;  %1210 = vmatpush.bf16.msrb.mxu3 %v1992_v33  ;;  %v2450_v60 = vpack.c.bf16 %v2443_v58, %v2441_v57  ;;  %v2452_v62 = vld [vmem:[#allocation2 + $0x30] sm:$0xff]  ;;  %v266_v27 = vmul.f32 %v2203_v13, %v2016_v26  ;;  %v1961_v37 = vld [vmem:[%s2731_s3 + $0x100] sm:$0xff]  ;;  %v2000_v33 = vld [vmem:[%s2731_s3 + $0x238] sm:$0xff]  ;;  %v2530_v34 = vadd.s32 %v2181_v9, %v296_v29 }
  0x2f   : > { %761 = vmatmul.bf16.vlgmr.msra.gmra.mxu3 %v684_v46  ;;  %v685_v16 = vpack.c.bf16 %v2454_v0, %v2452_v62  ;;  %v2551_v46 = vld [vmem:[#allocation2 + $0x50] sm:$0xff]  ;;  %v1977_v56 = vld [vmem:[%s2731_s3 + $0x180] sm:$0xff]  ;;  %v1986_v4 = vld [vmem:[%s2731_s3 + $0x1c8] sm:$0xff]  ;;  %v912_v17 = vpack.c.bf16 %v2441_v57, %v2377_v32  ;;  %v2089_v57 = vpack.c.bf16 %v2314_v2, %v2265_v45 }
  0x30   : > { %534 = vmatpush.bf16.msrb.mxu1 %v1935_v30  ;;  %868 = vmatpush.bf16.msrb.mxu0 %v1967_v35  ;;  %v1976_v30 = vld [vmem:[%s2731_s3 + $0x178] sm:$0xff]  ;;  %v278_v13 = vadd.f32 %v2217_v20, %v266_v27  ;;  %v2534_v35 = vld [vmem:[#allocation2 + $0x42] sm:$0xff]  ;;  %vm313_vm12 = vcmp.lt.s32.totalorder %v2530_v34, 128  ;;  %v1975_v20 = vld [vmem:[%s2731_s3 + $0x170] sm:$0xff]  ;;  %v361_v32 = vpack.c.bf16 %v2551_v46, %v2454_v0 }
  0x31   : > { %1097 = vmatpush.bf16.msrb.mxu2 %v1983_v38  ;;  %v2536_v38 = vld [vmem:[#allocation2 + $0x52] sm:$0xff]  ;;  %v913_v26 = vpack.c.bf16 %v2534_v35, %v2443_v58  ;;  %vm2094_vm0 = vmpackc.low %vm313_vm12, %vm312_vm5 }
  0x32   : > { %1211 = vmatpush.bf16.msrb.mxu3 %v1991_v47  ;;  %v2532_v5 = vmax.f32 %v278_v13, 0.0  ;;  %v2553_v47 = vld [vmem:[#allocation2 + $0x60] sm:$0xff]  ;;  %vm2103_vm1 = vmpackc.low %vm2115_vm8, %vm313_vm12 }
  0x34   : > { %535 = vmatpush.bf16.msrb.mxu1 %v1934_v43  ;;  %869 = vmatpush.bf16.msrb.mxu0 %v1966_v48  ;;  %v321_v9 = vsel %vm313_vm12, %v2532_v5, 0.0  ;;  %v2549_v43 = vpack.c.bf16 %v2536_v38, %v2534_v35  ;;  %v1999_v48 = vld [vmem:[%s2731_s3 + $0x230] sm:$0xff]  ;;  %v2095_v45 = vpack.c.bf16 %v2532_v5, %v2326_v8  ;;  %v2104_v2 = vpack.c.bf16 %v1140_v61, %v2532_v5 }
  0x35   : > { %1098 = vmatpush.bf16.msrb.mxu2 %v1982_v49  ;;  %350 = vst [vmem:[#allocation2 + $0x81] sm:$0xff] %v321_v9  ;;  %v1974_v49 = vld [vmem:[%s2731_s3 + $0x168] sm:$0xff] }
  0x36   : > { %1212 = vmatpush.bf16.msrb.mxu3 %v1990_v52  ;;  %v1998_v52 = vld [vmem:[%s2731_s3 + $0x228] sm:$0xff] }
  0x38   : > { %536 = vmatpush.bf16.msrb.mxu1 %v1933_v51  ;;  %870 = vmatpush.bf16.msrb.mxu0 %v1965_v53  ;;  %v686_v51 = vpack.c.bf16 %v2553_v47, %v2551_v46  ;;  %v1997_v53 = vld [vmem:[%s2731_s3 + $0x220] sm:$0xff] }
  0x39   : > { %1099 = vmatpush.bf16.msrb.mxu2 %v1981_v54  ;;  %v1972_v54 = vld [vmem:[%s2731_s3 + $0x158] sm:$0xff] }
  0x3a   : > { %1213 = vmatpush.bf16.msrb.mxu3 %v1989_v19 }
  0x3b   : > { %2078 = vmatmul.msk.bf16.gmra.mxu1 %vm2466_vm10, %v2472_v12  ;;  %2081 = vmatmul.msk.bf16.gmra.mxu0 %vm2481_vm11, %v2487_v15 }
  0x3c   : > { %537 = vmatpush.bf16.msrb.mxu1 %v1932_v55  ;;  %871 = vmatpush.bf16.msrb.mxu0 %v1964_v59  ;;  %v2594_v55 = vld [vmem:[#allocation2 + $0x62] sm:$0xff]  ;;  %v2596_v59 = vld [vmem:[#allocation2 + $0x72] sm:$0xff] }
  0x3d   : > { %1100 = vmatpush.bf16.msrb.mxu2 %v1980_v18  ;;  %v682_v18 = vld [vmem:[#allocation2 + $0x70] sm:$0xff]  ;;  %v683_v19 = vld [vmem:[#allocation2 + $0x80] sm:$0xff] }
  0x3e   : > { %652 = vmatmul.bf16.gmra.mxu2 %v2450_v60  ;;  %1214 = vmatpush.bf16.msrb.mxu3 %v1988_v25  ;;  %v1993_v25 = vld [vmem:[%s2731_s3 + $0x200] sm:$0xff]  ;;  %v362_v22 = vpack.c.bf16 %v682_v18, %v2553_v47  ;;  %v1030_v50 = vpack.c.bf16 0.0, %v683_v19 }
  0x3f   : > { %766 = vmatmul.bf16.gmra.mxu3 %v685_v16  ;;  %v2605_v16 = vpack.c.bf16 %v2596_v59, %v2594_v55  ;;  %v1253_v8 = vld [vmem:[#allocation2 + $0x82] sm:$0xff] }
  0x40   : > { %538 = vmatpush.bf16.msrb.mxu1 %v1931_v1  ;;  %872 = vmatpush.bf16.msrb.mxu0 %v1963_v7  ;;  %v1971_v1 = vld [vmem:[%s2731_s3 + $0x150] sm:$0xff]  ;;  %v360_v7 = vpack.c.bf16 %v2452_v62, %v2410_v42  ;;  %v1970_v42 = vld [vmem:[%s2731_s3 + $0x148] sm:$0xff]  ;;  %v1996_v62 = vld [vmem:[%s2731_s3 + $0x218] sm:$0xff]  ;;  %v1258_v0 = vpack.c.bf16 %v1254_v39, %v1253_v8  ;;  %v915_v27 = vpack.c.bf16 %v1253_v8, %v2596_v59 }
  0x41   : > { %1101 = vmatpush.bf16.msrb.mxu2 %v1979_v24  ;;  %v1994_v24 = vld [vmem:[%s2731_s3 + $0x208] sm:$0xff] }
  0x42   : > { %1215 = vmatpush.bf16.msrb.mxu3 %v1987_v31 }
  0x44   : > { %539 = vmatpush.bf16.msrb.mxu1 %v1930_v21  ;;  %873 = vmatpush.bf16.msrb.mxu0 %v1962_v23  ;;  %v2086_v21 = vpack.c.bf16 %v2263_v44, %v2328_v10  ;;  %v687_v23 = vpack.c.bf16 %v683_v19, %v682_v18  ;;  %v1995_v44 = vld [vmem:[%s2731_s3 + $0x210] sm:$0xff]  ;;  %v1969_v10 = vld [vmem:[%s2731_s3 + $0x140] sm:$0xff] }
  0x45   : > { %1102 = vmatpush.bf16.msrb.mxu2 %v1978_v3 }
  0x46   : > { %1216 = vmatpush.bf16.msrb.mxu3 %v1986_v4 }
  0x48   : > { %540 = vmatpush.bf16.msrb.mxu1 %v1929_v28  ;;  %874 = vmatpush.bf16.msrb.mxu0 %v1961_v37 }
  0x49   : > { %1103 = vmatpush.bf16.msrb.mxu2 %v1977_v56 }
  0x4a   : > { %1217 = vmatpush.bf16.msrb.mxu3 %v1985_v6 }
  0x4b   : > { %541 = vmatmul.bf16.vlgmr.msrb.gmra.mxu1 %v359_v41  ;;  %2084 = vmatmul.msk.bf16.vlgmr.msrb.gmra.mxu0 %vm2082_vm13, %v2083_v36 }
  0x4c   : > { %981 = vmatpush.bf16.msra.mxu1 %v1976_v30  ;;  %1324 = vmatpush.bf16.msra.mxu0 %v2000_v33 }
  0x4d   : > { %2051 = vmatpush.bf16.msra.mxu2 %v2000_v33 }
  0x4e   : > { %657 = vmatmul.bf16.gmra.mxu2 %v2549_v43 }
  0x4f   : > { %771 = vmatmul.bf16.gmra.mxu3 %v686_v51 }
  0x50   : > { %982 = vmatpush.bf16.msra.mxu1 %v1975_v20  ;;  %1325 = vmatpush.bf16.msra.mxu0 %v1999_v48 }
  0x51   : > { %2052 = vmatpush.bf16.msra.mxu2 %v1999_v48 }
  0x54   : > { %983 = vmatpush.bf16.msra.mxu1 %v1974_v49  ;;  %1326 = vmatpush.bf16.msra.mxu0 %v1998_v52 }
  0x55   : > { %2053 = vmatpush.bf16.msra.mxu2 %v1998_v52 }
  0x58   : > { %984 = vmatpush.bf16.msra.mxu1 %v1973_v63  ;;  %1327 = vmatpush.bf16.msra.mxu0 %v1997_v53 }
  0x59   : > { %2054 = vmatpush.bf16.msra.mxu2 %v1997_v53 }
  0x5b   : > { %546 = vmatmul.bf16.gmra.mxu1 %v360_v7  ;;  %2087 = vmatmul.msk.bf16.gmra.mxu0 %vm2085_vm14, %v2086_v21 }
  0x5c   : > { %985 = vmatpush.bf16.msra.mxu1 %v1972_v54  ;;  %1328 = vmatpush.bf16.msra.mxu0 %v1996_v62 }
  0x5d   : > { %2055 = vmatpush.bf16.msra.mxu2 %v1996_v62 }
  0x5e   : > { %662 = vmatmul.bf16.gmra.mxu2 %v2605_v16 }
  0x5f   : > { %776 = vmatmul.bf16.gmra.mxu3 %v687_v23 }
  0x60   : > { %986 = vmatpush.bf16.msra.mxu1 %v1971_v1  ;;  %1329 = vmatpush.bf16.msra.mxu0 %v1995_v44 }
  0x61   : > { %2056 = vmatpush.bf16.msra.mxu2 %v1995_v44 }
  0x64   : > { %987 = vmatpush.bf16.msra.mxu1 %v1970_v42  ;;  %1330 = vmatpush.bf16.msra.mxu0 %v1994_v24 }
  0x65   : > { %2057 = vmatpush.bf16.msra.mxu2 %v1994_v24 }
  0x68   : > { %988 = vmatpush.bf16.msra.mxu1 %v1969_v10  ;;  %1331 = vmatpush.bf16.msra.mxu0 %v1993_v25 }
  0x69   : > { %2058 = vmatpush.bf16.msra.mxu2 %v1993_v25 }
  0x6b   : > { %551 = vmatmul.bf16.gmra.mxu1 %v361_v32  ;;  %2090 = vmatmul.msk.bf16.gmra.mxu0 %vm2088_vm15, %v2089_v57 }
  0x6e   : > { %1104 = vmatmul.bf16.vlgmr.msrb.gmra.mxu2 %v360_v7 }
  0x6f   : > { %2093 = vmatmul.msk.bf16.vlgmr.msrb.gmra.mxu3 %vm2481_vm11, %v2487_v15 }
  0x7b   : > { %556 = vmatmul.bf16.gmra.mxu1 %v362_v22  ;;  %2096 = vmatmul.msk.bf16.gmra.mxu0 %vm2094_vm0, %v2095_v45 }
  0x7e   : > { %1109 = vmatmul.bf16.gmra.mxu2 %v361_v32 }
  0x7f   : > { %2099 = vmatmul.msk.bf16.gmra.mxu3 %vm2395_vm7, %v2401_v40  ;;  %v914_v40 = vpack.c.bf16 %v2594_v55, %v2536_v38 }
  0x8b   : > { %989 = vmatmul.bf16.vlgmr.msra.gmra.mxu1 %v912_v17  ;;  %1332 = vmatmul.bf16.vlgmr.msra.gmra.mxu0 %v2450_v60 }
  0x8e   : > { %1114 = vmatmul.bf16.gmra.mxu2 %v362_v22 }
  0x8f   : > { %2102 = vmatmul.msk.bf16.gmra.mxu3 %vm2466_vm10, %v2472_v12 }
  0x9b   : > { %994 = vmatmul.bf16.gmra.mxu1 %v913_v26  ;;  %1337 = vmatmul.bf16.gmra.mxu0 %v2549_v43 }
  0x9e   : > { %1119 = vmatmul.bf16.gmra.mxu2 %v1030_v50 }
  0x9f   : > { %2105 = vmatmul.msk.bf16.gmra.mxu3 %vm2103_vm1, %v2104_v2 }
  0xa8   : > { %v475_v58 = vpop.f32.mrf.mxu1  ;;  %v465_v60 = vpop.f32.mrf.mxu0 }
  0xab   : > { %999 = vmatmul.bf16.gmra.mxu1 %v914_v40  ;;  %1342 = vmatmul.bf16.gmra.mxu0 %v2605_v16 }
  0xae   : > { %1347 = vmatmul.bf16.vlgmr.msra.gmra.mxu2 %v1258_v0 }
  0xb0   : > { %v477_v12 = vpop.f32.mrf.mxu1  ;;  %v467_v14 = vpop.f32.mrf.mxu0 }
  0xb1   : > { %v648_v11 = vpop.f32.mrf.mxu2 }
  0xb2   : > { %v762_v15 = vpop.f32.mrf.mxu3 }
  0xb8   : > { %v480_v29 = vpop.f32.mrf.mxu1  ;;  %v470_v30 = vpop.f32.mrf.mxu0 }
  0xb9   : > { %v650_v28 = vpop.f32.mrf.mxu2 }
  0xba   : > { %v2673_v37 = vpop.f32.mrf.mxu3 }
  0xbb   : > { %1004 = vmatmul.bf16.gmra.mxu1 %v915_v27 }
  0xc0   : > { %v482_v33 = vpop.f32.mrf.mxu1  ;;  %v472_v34 = vpop.f32.mrf.mxu0 }
  0xc1   : > { %v653_v13 = vpop.f32.mrf.mxu2 }
  0xc2   : > { %v767_v5 = vpop.f32.mrf.mxu3 }
  0xc8   : > { %v542_v38 = vpop.f32.mrf.mxu1  ;;  %v876_v20 = vpop.f32.mrf.mxu0 }
  0xc9   : > { %v655_v35 = vpop.f32.mrf.mxu2  ;;  %v543_v9 = vadd.f32 %v542_v38, %v465_v60 }
  0xca   : > { %v2675_v43 = vpop.f32.mrf.mxu3 }
  0xcb   : > { %v668_v41 = vadd.f32 %v648_v11, %v543_v9 }
  0xcd   : > { %v782_v46 = vadd.f32 %v762_v15, %v668_v41 }
  0xcf   : > { %v896_v47 = vadd.f32 %v876_v20, %v782_v46 }
  0xd0   : > { %v544_v49 = vpop.f32.mrf.mxu1  ;;  %v878_v3 = vpop.f32.mrf.mxu0 }
  0xd1   : > { %v658_v48 = vpop.f32.mrf.mxu2  ;;  %v545_v36 = vadd.f32 %v544_v49, %v467_v14 }
  0xd2   : > { %v772_v52 = vpop.f32.mrf.mxu3 }
  0xd3   : > { %v669_v51 = vadd.f32 %v650_v28, %v545_v36 }
  0xd8   : > { %v547_v56 = vpop.f32.mrf.mxu1  ;;  %v881_v63 = vpop.f32.mrf.mxu0 }
  0xd9   : > { %v660_v31 = vpop.f32.mrf.mxu2  ;;  %v548_v4 = vadd.f32 %v547_v56, %v470_v30  ;;  %v783_v30 = vadd.f32 %v2673_v37, %v669_v51 }
  0xda   : > { %v2677_v1 = vpop.f32.mrf.mxu3 }
  0xdb   : > { %v670_v53 = vadd.f32 %v653_v13, %v548_v4 }
  0xdd   : > { %v784_v54 = vadd.f32 %v767_v5, %v670_v53 }
  0xdf   : > { %v898_v55 = vadd.f32 %v881_v63, %v784_v54 }
  0xe0   : > { %v549_v7 = vpop.f32.mrf.mxu1  ;;  %v883_v16 = vpop.f32.mrf.mxu0 }
  0xe1   : > { %v663_v59 = vpop.f32.mrf.mxu2  ;;  %v550_v18 = vadd.f32 %v549_v7, %v472_v34 }
  0xe2   : > { %v2679_v6 = vpop.f32.mrf.mxu3 }
  0xe3   : > { %v671_v19 = vadd.f32 %v655_v35, %v550_v18 }
  0xe8   : > { %v552_v23 = vpop.f32.mrf.mxu1  ;;  %v886_v42 = vpop.f32.mrf.mxu0 }
  0xe9   : > { %v665_v21 = vpop.f32.mrf.mxu2  ;;  %v553_v62 = vadd.f32 %v552_v23, %v475_v58 }
  0xea   : > { %v2687_v22 = vpop.f32.mrf.mxu3 }
  0xeb   : > { %v672_v17 = vadd.f32 %v658_v48, %v553_v62 }
  0xed   : > { %v786_v44 = vadd.f32 %v772_v52, %v672_v17 }
  0xef   : > { %v2681_v10 = vadd.f32 %v886_v42, %v786_v44 }
  0xf0   : > { %v554_v32 = vpop.f32.mrf.mxu1  ;;  %v2683_v57 = vpop.f32.mrf.mxu0 }
  0xf1   : > { %v1105_v24 = vpop.f32.mrf.mxu2  ;;  %v555_v25 = vadd.f32 %v554_v32, %v477_v12 }
  0xf2   : > { %v1219_v39 = vpop.f32.mrf.mxu3 }
  0xf3   : > { %v2685_v26 = vadd.f32 %v660_v31, %v555_v25  ;;  %v785_v31 = vadd.f32 %v2675_v43, %v671_v19 }
  0xf8   : > { %v557_v50 = vpop.f32.mrf.mxu1  ;;  %v2689_v61 = vpop.f32.mrf.mxu0 }
  0xf9   : > { %v1107_v45 = vpop.f32.mrf.mxu2  ;;  %v558_v2 = vadd.f32 %v557_v50, %v480_v29  ;;  %v897_v29 = vadd.f32 %v878_v3, %v783_v30 }
  0xfa   : > { %v1221_v12 = vpop.f32.mrf.mxu3 }
  0xfb   : > { %v2691_v8 = vadd.f32 %v663_v59, %v558_v2  ;;  %v899_v59 = vadd.f32 %v883_v16, %v785_v31 }
 0x100   : > { %v559_v58 = vpop.f32.mrf.mxu1  ;;  %v2693_v60 = vpop.f32.mrf.mxu0 }
 0x101   : > { %v1110_v40 = vpop.f32.mrf.mxu2  ;;  %v560_v0 = vadd.f32 %v559_v58, %v482_v33 }
 0x102   : > { %v1224_v20 = vpop.f32.mrf.mxu3 }
 0x103   : > { %v2695_v11 = vadd.f32 %v665_v21, %v560_v0 }
 0x108   : > { %v990_v14 = vpop.f32.mrf.mxu1  ;;  %v1333_v15 = vpop.f32.mrf.mxu0 }
 0x109   : > { %v1010_v27 = vadd.f32 %v990_v14, %v896_v47  ;;  %v1112_v28 = vpop.f32.mrf.mxu2 }
 0x10a   : > { %v1226_v4 = vpop.f32.mrf.mxu3 }
 0x10b   : > { %v1125_v13 = vadd.f32 %v1105_v24, %v1010_v27 }
 0x10d   : > { %v1239_v34 = vadd.f32 %v1219_v39, %v1125_v13  ;;  %v787_v39 = vadd.f32 %v2677_v1, %v2685_v26 }
 0x10f   : > { %v1353_v41 = vadd.f32 %v1333_v15, %v1239_v34 }
 0x110   : > { %v992_v5 = vpop.f32.mrf.mxu1  ;;  %v1335_v35 = vpop.f32.mrf.mxu0 }
 0x111   : > { %v1011_v38 = vadd.f32 %v992_v5, %v897_v29  ;;  %v1115_v33 = vpop.f32.mrf.mxu2  ;;  %v1391_v49 = vmul.f32 %v1353_v41, %v1353_v41 }
 0x113   : > { %v1126_v9 = vadd.f32 %v1107_v45, %v1011_v38 }
 0x115   : > { %v1240_v46 = vadd.f32 %v1221_v12, %v1126_v9  ;;  %v901_v12 = vadd.f32 %v2683_v57, %v787_v39 }
 0x117   : > { %v1354_v48 = vadd.f32 %v1335_v35, %v1240_v46 }
 0x118   : > { %v995_v37 = vpop.f32.mrf.mxu1  ;;  %v1338_v47 = vpop.f32.mrf.mxu0 }
 0x119   : > { %v2020_v3 = vpack.c.bf16 %v1354_v48, %v1353_v41  ;;  %v1377_v36 = vadd.f32 %v1354_v48, %v1353_v41  ;;  %v1392_v51 = vmul.f32 %v1354_v48, %v1354_v48  ;;  %v1012_v52 = vadd.f32 %v995_v37, %v898_v55  ;;  %v1117_v54 = vpop.f32.mrf.mxu2  ;;  %v1229_v55 = vpop.f32.mrf.mxu3 }
 0x11a   : > { %v789_v48 = vadd.f32 %v2687_v22, %v2695_v11 }
 0x11b   : > { %2021 = vst [vmem:[%s2703_s28] sm:$0xff] %v2020_v3   ;;  %v1399_v56 = vadd.f32 %v1392_v51, %v1391_v49  ;;  %v1127_v63 = vadd.f32 %v1110_v40, %v1012_v52 }
 0x11d   : > { %v1241_v53 = vadd.f32 %v1224_v20, %v1127_v63 }
 0x11f   : > { %v1355_v7 = vadd.f32 %v1338_v47, %v1241_v53  ;;  %v903_v47 = vadd.f32 %v2693_v60, %v789_v48 }
 0x120   : > { %v997_v18 = vpop.f32.mrf.mxu1  ;;  %v1340_v21 = vpop.f32.mrf.mxu0 }
 0x121   : > { %v1378_v23 = vadd.f32 %v1377_v36, %v1355_v7  ;;  %v1393_v42 = vmul.f32 %v1355_v7, %v1355_v7  ;;  %v1013_v62 = vadd.f32 %v997_v18, %v899_v59  ;;  %v1120_v43 = vpop.f32.mrf.mxu2  ;;  %v1231_v15 = vpop.f32.mrf.mxu3 }
 0x123   : > { %v1400_v17 = vadd.f32 %v1399_v56, %v1393_v42  ;;  %v1128_v44 = vadd.f32 %v1112_v28, %v1013_v62 }
 0x125   : > { %v1242_v24 = vadd.f32 %v1226_v4, %v1128_v44 }
 0x127   : > { %v1356_v32 = vadd.f32 %v1340_v21, %v1242_v24 }
 0x128   : > { %v1000_v19 = vpop.f32.mrf.mxu1  ;;  %v1343_v16 = vpop.f32.mrf.mxu0 }
 0x129   : > { %v2025_v25 = vpack.c.bf16 %v1356_v32, %v1355_v7  ;;  %v1379_v45 = vadd.f32 %v1378_v23, %v1356_v32  ;;  %v1394_v50 = vmul.f32 %v1356_v32, %v1356_v32  ;;  %v1014_v2 = vadd.f32 %v1000_v19, %v2681_v10  ;;  %v1122_v29 = vpop.f32.mrf.mxu2  ;;  %v1234_v46 = vpop.f32.mrf.mxu3 }
 0x12a   : > { %v788_v10 = vadd.f32 %v2679_v6, %v2691_v8 }
 0x12b   : > { %2040 = vst [vmem:[%s2703_s28 + $0x8] sm:$0xff] %v2025_v25   ;;  %v1401_v40 = vadd.f32 %v1400_v17, %v1394_v50  ;;  %v1129_v58 = vadd.f32 %v1115_v33, %v1014_v2 }
 0x12c   : > { %v902_v35 = vadd.f32 %v2689_v61, %v788_v10 }
 0x12d   : > { %v1243_v0 = vadd.f32 %v1229_v55, %v1129_v58 }
 0x12f   : > { %v1357_v14 = vadd.f32 %v1343_v16, %v1243_v0 }
 0x130   : > { %v1002_v27 = vpop.f32.mrf.mxu1  ;;  %v1345_v1 = vpop.f32.mrf.mxu0 }
 0x131   : > { %v1380_v28 = vadd.f32 %v1379_v45, %v1357_v14  ;;  %v1395_v30 = vmul.f32 %v1357_v14, %v1357_v14  ;;  %v1015_v13 = vadd.f32 %v1002_v27, %v901_v12  ;;  %v1348_v8 = vpop.f32.mrf.mxu2  ;;  %v1236_v63 = vpop.f32.mrf.mxu3 }
 0x133   : > { %v1402_v34 = vadd.f32 %v1401_v40, %v1395_v30  ;;  %v1130_v5 = vadd.f32 %v1117_v54, %v1015_v13 }
 0x135   : > { %v1244_v26 = vadd.f32 %v1231_v15, %v1130_v5 }
 0x137   : > { %v1358_v38 = vadd.f32 %v1345_v1, %v1244_v26 }
 0x138   : > { %v1005_v20 = vpop.f32.mrf.mxu1 }
 0x139   : > { %v2030_v57 = vpack.c.bf16 %v1358_v38, %v1357_v14  ;;  %v1381_v9 = vadd.f32 %v1380_v28, %v1358_v38  ;;  %v1396_v41 = vmul.f32 %v1358_v38, %v1358_v38  ;;  %v1016_v33 = vadd.f32 %v1005_v20, %v902_v35  ;;  %v1350_v22 = vpop.f32.mrf.mxu2 }
 0x13b   : > { %2041 = vst [vmem:[%s2703_s28 + $0x10] sm:$0xff] %v2030_v57   ;;  %v1403_v49 = vadd.f32 %v1402_v34, %v1396_v41  ;;  %v1131_v6 = vadd.f32 %v1120_v43, %v1016_v33 }
 0x13d   : > { %v1245_v37 = vadd.f32 %v1234_v46, %v1131_v6 }
 0x13f   : > { %v1359_v61 = vadd.f32 %v1348_v8, %v1245_v37 }
 0x140   : > { %v1007_v3 = vpop.f32.mrf.mxu1 }
 0x141   : > { %v1382_v36 = vadd.f32 %v1381_v9, %v1359_v61  ;;  %v1397_v51 = vmul.f32 %v1359_v61, %v1359_v61  ;;  %v1017_v52 = vadd.f32 %v1007_v3, %v903_v47 }
 0x143   : > { %v1404_v31 = vadd.f32 %v1403_v49, %v1397_v51  ;;  %v1132_v56 = vadd.f32 %v1122_v29, %v1017_v52 }
 0x145   : > { %v1246_v4 = vadd.f32 %v1236_v63, %v1132_v56 }
 0x147   : > { %v1360_v11 = vadd.f32 %v1350_v22, %v1246_v4 }
 0x149   : > { %v2035_v53 = vpack.c.bf16 %v1360_v11, %v1359_v61  ;;  %v1383_v54 = vadd.f32 %v1382_v36, %v1360_v11  ;;  %v1398_v59 = vmul.f32 %v1360_v11, %v1360_v11 }
 0x14b   : > { %2042 = vst [vmem:[%s2703_s28 + $0x18] sm:$0xff] %v2035_v53   ;;  %v1384_v7 = vrot.slane %v1383_v54, 4  ;;  %v1405_v60 = vadd.f32 %v1404_v31, %v1398_v59 }
 0x14d   : > { %v1385_v18 = vadd.f32 %v1384_v7, %v1383_v54  ;;  %v1406_v21 = vrot.slane %v1405_v60, 4 }
 0x14f   : > { %v1386_v23 = vrot.slane %v1385_v18, 2  ;;  %v1407_v42 = vadd.f32 %v1406_v21, %v1405_v60 }
 0x151   : > { %v1387_v62 = vadd.f32 %v1386_v23, %v1385_v18  ;;  %v1408_v17 = vrot.slane %v1407_v42, 2 }
 0x153   : > { %v1388_v44 = vrot.slane %v1387_v62, 1  ;;  %v1409_v24 = vadd.f32 %v1408_v17, %v1407_v42 }
 0x155   : > { %v1389_v55 = vadd.f32 %v1388_v44, %v1387_v62  ;;  %v1410_v32 = vrot.slane %v1409_v24, 1 }
 0x157   : > { %1390 = vst [vmem:[%s238_s30] sm:$0x1] %v1389_v55  ;;  %v1411_v43 = vadd.f32 %v1410_v32, %v1409_v24 }
 0x159   : > { %1412 = vst [vmem:[%s238_s30 + $0x1] sm:$0x1] %v1411_v43 }
 0x15a PF: > { %s16_s18 = sadd.s32 1, %s2112_s18  }
 0x15b   : > { %p13_p5 = scmp.ge.s32.totalorder %s16_s18, 4  }
 0x15d   :  { %15 = sbr.rel (!%p13_p5) target bundleno = 1 (0x1), region = 88 }

</bundles_post_ra>
